<compile_context>
chip_gen: v7x
topology: tpu7x:2x2x1
jax: 0.10.0
libtpu: 0.0.40
codegen_flags: <defaults>
</compile_context>

<pallas_src>
import math

import jax
import jax.numpy as jnp
from jax.experimental import pallas as pl
from jax.experimental.pallas import tpu as pltpu


def _bigru_layer_kernel(gir_ref, giz_ref, gin_ref,
                        whr_ref, whz_ref, whn_ref,
                        bhn_ref, h0_ref, out_ref, hf_scr, hb_scr):
    """Sequential GRU recurrence, both directions interleaved per step.

    gir/giz/gin_ref: (2, T, B, H)  precomputed x @ W_ih_g + folded biases
    whr/whz/whn_ref: (2, H, H)     per-gate hidden weights (already transposed)
    bhn_ref:         (2, 1, H)     b_hh for the n gate (kept inside r * (...))
    h0_ref:          (2, B, H)     [0]=forward, [1]=backward initial state
    out_ref:         (2, T, B, H)
    hf_scr, hb_scr:  (B, H)        VMEM scratch carrying the hidden states
    """
    T = gir_ref.shape[1]

    # Hoist weight / bias loads out of the time loop (static leading-dim index).
    whr_f, whr_b = whr_ref[0], whr_ref[1]
    whz_f, whz_b = whz_ref[0], whz_ref[1]
    whn_f, whn_b = whn_ref[0], whn_ref[1]
    bhn_f, bhn_b = bhn_ref[0], bhn_ref[1]          # (1, H) -> broadcasts vs (B, H)

    hf_scr[...] = h0_ref[0]
    hb_scr[...] = h0_ref[1]

    def cell(gi_r, gi_z, gi_n, h_prev, whr, whz, whn, bhn):
        r = jax.nn.sigmoid(
            gi_r + jnp.dot(h_prev, whr, preferred_element_type=jnp.float32))
        z = jax.nn.sigmoid(
            gi_z + jnp.dot(h_prev, whz, preferred_element_type=jnp.float32))
        gh_n = jnp.dot(h_prev, whn, preferred_element_type=jnp.float32) + bhn
        n = jnp.tanh(gi_n + r * gh_n)
        return (1.0 - z) * n + z * h_prev

    def step(i, carry):
        tf = i                 # forward time index
        tb = T - 1 - i         # backward time index (no materialized reversal)

        h_f = cell(gir_ref[0, tf], giz_ref[0, tf], gin_ref[0, tf],
                   hf_scr[...], whr_f, whz_f, whn_f, bhn_f)
        h_b = cell(gir_ref[1, tb], giz_ref[1, tb], gin_ref[1, tb],
                   hb_scr[...], whr_b, whz_b, whn_b, bhn_b)

        hf_scr[...] = h_f
        hb_scr[...] = h_b
        out_ref[0, tf] = h_f.astype(out_ref.dtype)
        out_ref[1, tb] = h_b.astype(out_ref.dtype)
        return carry

    # Fully unrolled: per-step work is tiny, so give the scheduler visibility to
    # overlap one direction's EUP sigmoid/tanh with the other's hh matmuls.
    jax.lax.fori_loop(0, T, step, 0, unroll=True)


def bigru_layer(x_tbd, p, h0_pair):
    """One bidirectional GRU layer.  x_tbd: (T, B, D) -> (T, B, 2H)."""
    T, B, _ = x_tbd.shape
    H = h0_pair.shape[-1]

    # --- Hoisted input projection: one big (T*B, D) x (D, H) matmul per gate,
    #     both directions at once, off the serial dependency chain. ---
    gi_r = jnp.einsum('tbd,xdh->xtbh', x_tbd, p['wi_r']) + p['b_r'][:, None]
    gi_z = jnp.einsum('tbd,xdh->xtbh', x_tbd, p['wi_z']) + p['b_z'][:, None]
    gi_n = jnp.einsum('tbd,xdh->xtbh', x_tbd, p['wi_n']) + p['b_in'][:, None]

    out = pl.pallas_call(
        _bigru_layer_kernel,
        out_shape=jax.ShapeDtypeStruct((2, T, B, H), jnp.float32),
        scratch_shapes=[pltpu.VMEM((B, H), jnp.float32),
                        pltpu.VMEM((B, H), jnp.float32)],
    )(gi_r, gi_z, gi_n,
      p['wh_r'], p['wh_z'], p['wh_n'], p['b_hn'], h0_pair)

    # (2, T, B, H) -> (T, B, 2H), equal to concat([forward, backward], axis=-1),
    # matching nn.GRU(bidirectional=True) output layout.
    return jnp.transpose(out, (1, 2, 0, 3)).reshape(T, B, 2 * H)


class BiGRUPallas:
    """JAX/Pallas equivalent of the PyTorch BiGRU module's forward pass."""

    def __init__(self, input_size, hidden_size, num_layers, dropout_rate, key):
        self.input_size = input_size
        self.hidden_size = hidden_size
        self.num_layers = num_layers
        self.num_directions = 2
        self.dropout_rate = dropout_rate

        H = hidden_size
        bound = 1.0 / math.sqrt(H)
        self.layers = []
        for layer in range(num_layers):
            in_size = input_size if layer == 0 else 2 * hidden_size
            raw = []
            for _ in range(self.num_directions):
                key, k1, k2, k3, k4 = jax.random.split(key, 5)
                w_ih = jax.random.uniform(k1, (3 * H, in_size), jnp.float32,
                                          -bound, bound)
                w_hh = jax.random.uniform(k2, (3 * H, H), jnp.float32,
                                          -bound, bound)
                b_ih = jax.random.uniform(k3, (3 * H,), jnp.float32,
                                          -bound, bound)
                b_hh = jax.random.uniform(k4, (3 * H,), jnp.float32,
                                          -bound, bound)
                raw.append((w_ih, w_hh, b_ih, b_hh))

            def gate(w, g):          # (3H, X) gate slice -> transposed (X, H)
                return w[g * H:(g + 1) * H, :].T

            p = {
                # per-gate, per-direction stacked weights (PyTorch gate order r,z,n)
                'wi_r': jnp.stack([gate(raw[x][0], 0) for x in range(2)]),  # (2,in,H)
                'wi_z': jnp.stack([gate(raw[x][0], 1) for x in range(2)]),
                'wi_n': jnp.stack([gate(raw[x][0], 2) for x in range(2)]),
                'wh_r': jnp.stack([gate(raw[x][1], 0) for x in range(2)]),  # (2,H,H)
                'wh_z': jnp.stack([gate(raw[x][1], 1) for x in range(2)]),
                'wh_n': jnp.stack([gate(raw[x][1], 2) for x in range(2)]),
                # folded biases: b_ih + b_hh for r/z; b_ih_n alone; b_hh_n kept
                # separate because it sits inside r * (W_hn h + b_hn).
                'b_r':  jnp.stack([(raw[x][2][0:H] + raw[x][3][0:H])[None, :]
                                   for x in range(2)]),                     # (2,1,H)
                'b_z':  jnp.stack([(raw[x][2][H:2 * H] + raw[x][3][H:2 * H])[None, :]
                                   for x in range(2)]),
                'b_in': jnp.stack([raw[x][2][2 * H:3 * H][None, :]
                                   for x in range(2)]),
                'b_hn': jnp.stack([raw[x][3][2 * H:3 * H][None, :]
                                   for x in range(2)]),
            }
            self.layers.append(p)

    def __call__(self, input_seq, test):
        B, T, _ = input_seq.shape
        if test == 'test':
            h0 = jnp.zeros((self.num_layers * self.num_directions, B,
                            self.hidden_size), jnp.float32)
        else:
            h0 = jax.random.normal(
                jax.random.PRNGKey(1),
                (self.num_layers * self.num_directions, B, self.hidden_size),
                jnp.float32)

        x = jnp.transpose(input_seq, (1, 0, 2)).astype(jnp.float32)  # (T, B, F)
        for layer, p in enumerate(self.layers):
            h0_pair = h0[2 * layer:2 * layer + 2]   # [0]=forward, [1]=backward
            x = bigru_layer(x, p, h0_pair)          # (T, B, 2H)
            # TODO(synk): inter-layer dropout is training-mode-only in PyTorch;
            # skipped here (eval / test-path semantics).
        return jnp.transpose(x, (1, 0, 2))          # (B, T, 2H)


if __name__ == "__main__":
    key = jax.random.PRNGKey(0)
    key, pkey, xkey = jax.random.split(key, 3)

    batch, seq = 2, 8
    input_size, hidden_size, num_layers, dropout_rate = 16, 32, 2, 0.5

    model = BiGRUPallas(input_size, hidden_size, num_layers, dropout_rate, pkey)
    input_seq = jax.random.normal(xkey, (batch, seq, input_size), jnp.float32)

    # jit the whole forward so the hoisted input projections / transposes fuse
    # around the per-layer recurrence kernels.
    forward = jax.jit(lambda x: model(x, 'test'))

    out = forward(input_seq)
    out = jax.block_until_ready(out)

    assert out.shape == (batch, seq, 2 * hidden_size), out.shape
    assert out.dtype == jnp.float32
    assert bool(jnp.all(jnp.isfinite(out)))
    print("KERNEL_OK")
</pallas_src>

<mosaic_0001>
module attributes {stable_mosaic.version = 11 : i64} {
  func.func @_bigru_layer_kernel(%arg0: memref<2x8x2x32xf32, #tpu.memory_space<vmem>>, %arg1: memref<2x8x2x32xf32, #tpu.memory_space<vmem>>, %arg2: memref<2x8x2x32xf32, #tpu.memory_space<vmem>>, %arg3: memref<2x32x32xf32, #tpu.memory_space<vmem>>, %arg4: memref<2x32x32xf32, #tpu.memory_space<vmem>>, %arg5: memref<2x32x32xf32, #tpu.memory_space<vmem>>, %arg6: memref<2x1x32xf32, #tpu.memory_space<vmem>>, %arg7: memref<2x2x32xf32, #tpu.memory_space<vmem>>, %arg8: memref<2x8x2x32xf32, #tpu.memory_space<vmem>>, %arg9: memref<2x32xf32, #tpu.memory_space<vmem>>, %arg10: memref<2x32xf32, #tpu.memory_space<vmem>>) attributes {dimension_semantics = [], scalar_prefetch = 0 : i64, scratch_operands = 2 : i64, tpu.core_type = #tpu.core_type<tc>} {
    %c0 = arith.constant 0 : index
    %c0_0 = arith.constant 0 : index
    %c0_1 = arith.constant 0 : index
    %0 = vector.load %arg3[%c0, %c0_0, %c0_1] : memref<2x32x32xf32, #tpu.memory_space<vmem>>, vector<1x32x32xf32>
    %1 = vector.shape_cast %0 : vector<1x32x32xf32> to vector<32x32xf32>
    %c1 = arith.constant 1 : index
    %c0_2 = arith.constant 0 : index
    %c0_3 = arith.constant 0 : index
    %2 = vector.load %arg3[%c1, %c0_2, %c0_3] : memref<2x32x32xf32, #tpu.memory_space<vmem>>, vector<1x32x32xf32>
    %3 = vector.shape_cast %2 : vector<1x32x32xf32> to vector<32x32xf32>
    %c0_4 = arith.constant 0 : index
    %c0_5 = arith.constant 0 : index
    %c0_6 = arith.constant 0 : index
    %4 = vector.load %arg4[%c0_4, %c0_5, %c0_6] : memref<2x32x32xf32, #tpu.memory_space<vmem>>, vector<1x32x32xf32>
    %5 = vector.shape_cast %4 : vector<1x32x32xf32> to vector<32x32xf32>
    %c1_7 = arith.constant 1 : index
    %c0_8 = arith.constant 0 : index
    %c0_9 = arith.constant 0 : index
    %6 = vector.load %arg4[%c1_7, %c0_8, %c0_9] : memref<2x32x32xf32, #tpu.memory_space<vmem>>, vector<1x32x32xf32>
    %7 = vector.shape_cast %6 : vector<1x32x32xf32> to vector<32x32xf32>
    %c0_10 = arith.constant 0 : index
    %c0_11 = arith.constant 0 : index
    %c0_12 = arith.constant 0 : index
    %8 = vector.load %arg5[%c0_10, %c0_11, %c0_12] : memref<2x32x32xf32, #tpu.memory_space<vmem>>, vector<1x32x32xf32>
    %9 = vector.shape_cast %8 : vector<1x32x32xf32> to vector<32x32xf32>
    %c1_13 = arith.constant 1 : index
    %c0_14 = arith.constant 0 : index
    %c0_15 = arith.constant 0 : index
    %10 = vector.load %arg5[%c1_13, %c0_14, %c0_15] : memref<2x32x32xf32, #tpu.memory_space<vmem>>, vector<1x32x32xf32>
    %11 = vector.shape_cast %10 : vector<1x32x32xf32> to vector<32x32xf32>
    %c0_16 = arith.constant 0 : index
    %c0_17 = arith.constant 0 : index
    %c0_18 = arith.constant 0 : index
    %12 = vector.load %arg6[%c0_16, %c0_17, %c0_18] : memref<2x1x32xf32, #tpu.memory_space<vmem>>, vector<1x1x32xf32>
    %13 = vector.shape_cast %12 : vector<1x1x32xf32> to vector<1x32xf32>
    %c1_19 = arith.constant 1 : index
    %c0_20 = arith.constant 0 : index
    %c0_21 = arith.constant 0 : index
    %14 = vector.load %arg6[%c1_19, %c0_20, %c0_21] : memref<2x1x32xf32, #tpu.memory_space<vmem>>, vector<1x1x32xf32>
    %15 = vector.shape_cast %14 : vector<1x1x32xf32> to vector<1x32xf32>
    %c0_22 = arith.constant 0 : index
    %c0_23 = arith.constant 0 : index
    %c0_24 = arith.constant 0 : index
    %16 = vector.load %arg7[%c0_22, %c0_23, %c0_24] : memref<2x2x32xf32, #tpu.memory_space<vmem>>, vector<1x2x32xf32>
    %17 = vector.shape_cast %16 : vector<1x2x32xf32> to vector<2x32xf32>
    %c0_25 = arith.constant 0 : index
    %c0_26 = arith.constant 0 : index
    %18 = vector.load %arg9[%c0_25, %c0_26] : memref<2x32xf32, #tpu.memory_space<vmem>>, vector<2x32xf32>
    tpu.vector_store %arg9[%c0_25, %c0_26], %17 {strides = array<i32>} : memref<2x32xf32, #tpu.memory_space<vmem>>, vector<2x32xf32>,
    %c1_27 = arith.constant 1 : index
    %c0_28 = arith.constant 0 : index
    %c0_29 = arith.constant 0 : index
    %19 = vector.load %arg7[%c1_27, %c0_28, %c0_29] : memref<2x2x32xf32, #tpu.memory_space<vmem>>, vector<1x2x32xf32>
    %20 = vector.shape_cast %19 : vector<1x2x32xf32> to vector<2x32xf32>
    %c0_30 = arith.constant 0 : index
    %c0_31 = arith.constant 0 : index
    %21 = vector.load %arg10[%c0_30, %c0_31] : memref<2x32xf32, #tpu.memory_space<vmem>>, vector<2x32xf32>
    tpu.vector_store %arg10[%c0_30, %c0_31], %20 {strides = array<i32>} : memref<2x32xf32, #tpu.memory_space<vmem>>, vector<2x32xf32>,
    %c0_i32 = arith.constant 0 : i32
    %c7_i32 = arith.constant 7 : i32
    %22 = arith.subi %c7_i32, %c0_i32 : i32
    %c0_32 = arith.constant 0 : index
    %23 = arith.index_cast %c0_i32 : i32 to index
    %c0_33 = arith.constant 0 : index
    %c0_34 = arith.constant 0 : index
    %24 = vector.load %arg0[%c0_32, %23, %c0_33, %c0_34] : memref<2x8x2x32xf32, #tpu.memory_space<vmem>>, vector<1x1x2x32xf32>
    %25 = vector.shape_cast %24 : vector<1x1x2x32xf32> to vector<2x32xf32>
    %c0_35 = arith.constant 0 : index
    %26 = arith.index_cast %c0_i32 : i32 to index
    %c0_36 = arith.constant 0 : index
    %c0_37 = arith.constant 0 : index
    %27 = vector.load %arg1[%c0_35, %26, %c0_36, %c0_37] : memref<2x8x2x32xf32, #tpu.memory_space<vmem>>, vector<1x1x2x32xf32>
    %28 = vector.shape_cast %27 : vector<1x1x2x32xf32> to vector<2x32xf32>
    %c0_38 = arith.constant 0 : index
    %29 = arith.index_cast %c0_i32 : i32 to index
    %c0_39 = arith.constant 0 : index
    %c0_40 = arith.constant 0 : index
    %30 = vector.load %arg2[%c0_38, %29, %c0_39, %c0_40] : memref<2x8x2x32xf32, #tpu.memory_space<vmem>>, vector<1x1x2x32xf32>
    %31 = vector.shape_cast %30 : vector<1x1x2x32xf32> to vector<2x32xf32>
    %c0_41 = arith.constant 0 : index
    %c0_42 = arith.constant 0 : index
    %32 = vector.load %arg9[%c0_41, %c0_42] : memref<2x32xf32, #tpu.memory_space<vmem>>, vector<2x32xf32>
    %cst = arith.constant dense<0.000000e+00> : vector<2x32xf32>
    %33 = tpu.matmul %32, %1, %cst {dimension_numbers = #tpu.dot_dimension_numbers<[1], [0], [0], [1], [0, 0, 1, 1], [], []>} : vector<2x32xf32>, vector<32x32xf32>, vector<2x32xf32> -> vector<2x32xf32>
    %34 = arith.addf %25, %33 : vector<2x32xf32>
    %35 = arith.negf %34 : vector<2x32xf32>
    %36 = math.exp %35 : vector<2x32xf32>
    %cst_43 = arith.constant 1.000000e+00 : f32
    %37 = vector.broadcast %cst_43 : f32 to vector<2x32xf32>
    %38 = arith.addf %37, %36 : vector<2x32xf32>
    %39 = arith.divf %37, %38 : vector<2x32xf32>
    %cst_44 = arith.constant dense<0.000000e+00> : vector<2x32xf32>
    %40 = tpu.matmul %32, %5, %cst_44 {dimension_numbers = #tpu.dot_dimension_numbers<[1], [0], [0], [1], [0, 0, 1, 1], [], []>} : vector<2x32xf32>, vector<32x32xf32>, vector<2x32xf32> -> vector<2x32xf32>
    %41 = arith.addf %28, %40 : vector<2x32xf32>
    %42 = arith.negf %41 : vector<2x32xf32>
    %43 = math.exp %42 : vector<2x32xf32>
    %cst_45 = arith.constant 1.000000e+00 : f32
    %44 = vector.broadcast %cst_45 : f32 to vector<2x32xf32>
    %45 = arith.addf %44, %43 : vector<2x32xf32>
    %46 = arith.divf %44, %45 : vector<2x32xf32>
    %cst_46 = arith.constant dense<0.000000e+00> : vector<2x32xf32>
    %47 = tpu.matmul %32, %9, %cst_46 {dimension_numbers = #tpu.dot_dimension_numbers<[1], [0], [0], [1], [0, 0, 1, 1], [], []>} : vector<2x32xf32>, vector<32x32xf32>, vector<2x32xf32> -> vector<2x32xf32>
    %48 = vector.broadcast %13 : vector<1x32xf32> to vector<2x32xf32>
    %49 = arith.addf %47, %48 : vector<2x32xf32>
    %50 = arith.mulf %39, %49 : vector<2x32xf32>
    %51 = arith.addf %31, %50 : vector<2x32xf32>
    %52 = math.tanh %51 : vector<2x32xf32>
    %cst_47 = arith.constant 1.000000e+00 : f32
    %53 = vector.broadcast %cst_47 : f32 to vector<2x32xf32>
    %54 = arith.subf %53, %46 : vector<2x32xf32>
    %55 = arith.mulf %54, %52 : vector<2x32xf32>
    %56 = arith.mulf %46, %32 : vector<2x32xf32>
    %57 = arith.addf %55, %56 : vector<2x32xf32>
    %c1_48 = arith.constant 1 : index
    %58 = arith.index_cast %22 : i32 to index
    %c0_49 = arith.constant 0 : index
    %c0_50 = arith.constant 0 : index
    %59 = vector.load %arg0[%c1_48, %58, %c0_49, %c0_50] : memref<2x8x2x32xf32, #tpu.memory_space<vmem>>, vector<1x1x2x32xf32>
    %60 = vector.shape_cast %59 : vector<1x1x2x32xf32> to vector<2x32xf32>
    %c1_51 = arith.constant 1 : index
    %61 = arith.index_cast %22 : i32 to index
    %c0_52 = arith.constant 0 : index
    %c0_53 = arith.constant 0 : index
    %62 = vector.load %arg1[%c1_51, %61, %c0_52, %c0_53] : memref<2x8x2x32xf32, #tpu.memory_space<vmem>>, vector<1x1x2x32xf32>
    %63 = vector.shape_cast %62 : vector<1x1x2x32xf32> to vector<2x32xf32>
    %c1_54 = arith.constant 1 : index
    %64 = arith.index_cast %22 : i32 to index
    %c0_55 = arith.constant 0 : index
    %c0_56 = arith.constant 0 : index
    %65 = vector.load %arg2[%c1_54, %64, %c0_55, %c0_56] : memref<2x8x2x32xf32, #tpu.memory_space<vmem>>, vector<1x1x2x32xf32>
    %66 = vector.shape_cast %65 : vector<1x1x2x32xf32> to vector<2x32xf32>
    %c0_57 = arith.constant 0 : index
    %c0_58 = arith.constant 0 : index
    %67 = vector.load %arg10[%c0_57, %c0_58] : memref<2x32xf32, #tpu.memory_space<vmem>>, vector<2x32xf32>
    %cst_59 = arith.constant dense<0.000000e+00> : vector<2x32xf32>
    %68 = tpu.matmul %67, %3, %cst_59 {dimension_numbers = #tpu.dot_dimension_numbers<[1], [0], [0], [1], [0, 0, 1, 1], [], []>} : vector<2x32xf32>, vector<32x32xf32>, vector<2x32xf32> -> vector<2x32xf32>
    %69 = arith.addf %60, %68 : vector<2x32xf32>
    %70 = arith.negf %69 : vector<2x32xf32>
    %71 = math.exp %70 : vector<2x32xf32>
    %cst_60 = arith.constant 1.000000e+00 : f32
    %72 = vector.broadcast %cst_60 : f32 to vector<2x32xf32>
    %73 = arith.addf %72, %71 : vector<2x32xf32>
    %74 = arith.divf %72, %73 : vector<2x32xf32>
    %cst_61 = arith.constant dense<0.000000e+00> : vector<2x32xf32>
    %75 = tpu.matmul %67, %7, %cst_61 {dimension_numbers = #tpu.dot_dimension_numbers<[1], [0], [0], [1], [0, 0, 1, 1], [], []>} : vector<2x32xf32>, vector<32x32xf32>, vector<2x32xf32> -> vector<2x32xf32>
    %76 = arith.addf %63, %75 : vector<2x32xf32>
    %77 = arith.negf %76 : vector<2x32xf32>
    %78 = math.exp %77 : vector<2x32xf32>
    %cst_62 = arith.constant 1.000000e+00 : f32
    %79 = vector.broadcast %cst_62 : f32 to vector<2x32xf32>
    %80 = arith.addf %79, %78 : vector<2x32xf32>
    %81 = arith.divf %79, %80 : vector<2x32xf32>
    %cst_63 = arith.constant dense<0.000000e+00> : vector<2x32xf32>
    %82 = tpu.matmul %67, %11, %cst_63 {dimension_numbers = #tpu.dot_dimension_numbers<[1], [0], [0], [1], [0, 0, 1, 1], [], []>} : vector<2x32xf32>, vector<32x32xf32>, vector<2x32xf32> -> vector<2x32xf32>
    %83 = vector.broadcast %15 : vector<1x32xf32> to vector<2x32xf32>
    %84 = arith.addf %82, %83 : vector<2x32xf32>
    %85 = arith.mulf %74, %84 : vector<2x32xf32>
    %86 = arith.addf %66, %85 : vector<2x32xf32>
    %87 = math.tanh %86 : vector<2x32xf32>
    %cst_64 = arith.constant 1.000000e+00 : f32
    %88 = vector.broadcast %cst_64 : f32 to vector<2x32xf32>
    %89 = arith.subf %88, %81 : vector<2x32xf32>
    %90 = arith.mulf %89, %87 : vector<2x32xf32>
    %91 = arith.mulf %81, %67 : vector<2x32xf32>
    %92 = arith.addf %90, %91 : vector<2x32xf32>
    %c0_65 = arith.constant 0 : index
    %c0_66 = arith.constant 0 : index
    %93 = vector.load %arg9[%c0_65, %c0_66] : memref<2x32xf32, #tpu.memory_space<vmem>>, vector<2x32xf32>
    tpu.vector_store %arg9[%c0_65, %c0_66], %57 {strides = array<i32>} : memref<2x32xf32, #tpu.memory_space<vmem>>, vector<2x32xf32>,
    %c0_67 = arith.constant 0 : index
    %c0_68 = arith.constant 0 : index
    %94 = vector.load %arg10[%c0_67, %c0_68] : memref<2x32xf32, #tpu.memory_space<vmem>>, vector<2x32xf32>
    tpu.vector_store %arg10[%c0_67, %c0_68], %92 {strides = array<i32>} : memref<2x32xf32, #tpu.memory_space<vmem>>, vector<2x32xf32>,
    %c0_69 = arith.constant 0 : index
    %95 = arith.index_cast %c0_i32 : i32 to index
    %c0_70 = arith.constant 0 : index
    %c0_71 = arith.constant 0 : index
    %96 = vector.load %arg8[%c0_69, %95, %c0_70, %c0_71] : memref<2x8x2x32xf32, #tpu.memory_space<vmem>>, vector<1x1x2x32xf32>
    %97 = vector.shape_cast %96 : vector<1x1x2x32xf32> to vector<2x32xf32>
    %98 = vector.shape_cast %57 : vector<2x32xf32> to vector<1x1x2x32xf32>
    tpu.vector_store %arg8[%c0_69, %95, %c0_70, %c0_71], %98 {strides = array<i32>} : memref<2x8x2x32xf32, #tpu.memory_space<vmem>>, vector<1x1x2x32xf32>,
    %c1_72 = arith.constant 1 : index
    %99 = arith.index_cast %22 : i32 to index
    %c0_73 = arith.constant 0 : index
    %c0_74 = arith.constant 0 : index
    %100 = vector.load %arg8[%c1_72, %99, %c0_73, %c0_74] : memref<2x8x2x32xf32, #tpu.memory_space<vmem>>, vector<1x1x2x32xf32>
    %101 = vector.shape_cast %100 : vector<1x1x2x32xf32> to vector<2x32xf32>
    %102 = vector.shape_cast %92 : vector<2x32xf32> to vector<1x1x2x32xf32>
    tpu.vector_store %arg8[%c1_72, %99, %c0_73, %c0_74], %102 {strides = array<i32>} : memref<2x8x2x32xf32, #tpu.memory_space<vmem>>, vector<1x1x2x32xf32>,
    %c1_i32 = arith.constant 1 : i32
    %c7_i32_75 = arith.constant 7 : i32
    %103 = arith.subi %c7_i32_75, %c1_i32 : i32
    %c0_76 = arith.constant 0 : index
    %104 = arith.index_cast %c1_i32 : i32 to index
    %c0_77 = arith.constant 0 : index
    %c0_78 = arith.constant 0 : index
    %105 = vector.load %arg0[%c0_76, %104, %c0_77, %c0_78] : memref<2x8x2x32xf32, #tpu.memory_space<vmem>>, vector<1x1x2x32xf32>
    %106 = vector.shape_cast %105 : vector<1x1x2x32xf32> to vector<2x32xf32>
    %c0_79 = arith.constant 0 : index
    %107 = arith.index_cast %c1_i32 : i32 to index
    %c0_80 = arith.constant 0 : index
    %c0_81 = arith.constant 0 : index
    %108 = vector.load %arg1[%c0_79, %107, %c0_80, %c0_81] : memref<2x8x2x32xf32, #tpu.memory_space<vmem>>, vector<1x1x2x32xf32>
    %109 = vector.shape_cast %108 : vector<1x1x2x32xf32> to vector<2x32xf32>
    %c0_82 = arith.constant 0 : index
    %110 = arith.index_cast %c1_i32 : i32 to index
    %c0_83 = arith.constant 0 : index
    %c0_84 = arith.constant 0 : index
    %111 = vector.load %arg2[%c0_82, %110, %c0_83, %c0_84] : memref<2x8x2x32xf32, #tpu.memory_space<vmem>>, vector<1x1x2x32xf32>
    %112 = vector.shape_cast %111 : vector<1x1x2x32xf32> to vector<2x32xf32>
    %c0_85 = arith.constant 0 : index
    %c0_86 = arith.constant 0 : index
    %113 = vector.load %arg9[%c0_85, %c0_86] : memref<2x32xf32, #tpu.memory_space<vmem>>, vector<2x32xf32>
    %cst_87 = arith.constant dense<0.000000e+00> : vector<2x32xf32>
    %114 = tpu.matmul %113, %1, %cst_87 {dimension_numbers = #tpu.dot_dimension_numbers<[1], [0], [0], [1], [0, 0, 1, 1], [], []>} : vector<2x32xf32>, vector<32x32xf32>, vector<2x32xf32> -> vector<2x32xf32>
    %115 = arith.addf %106, %114 : vector<2x32xf32>
    %116 = arith.negf %115 : vector<2x32xf32>
    %117 = math.exp %116 : vector<2x32xf32>
    %cst_88 = arith.constant 1.000000e+00 : f32
    %118 = vector.broadcast %cst_88 : f32 to vector<2x32xf32>
    %119 = arith.addf %118, %117 : vector<2x32xf32>
    %120 = arith.divf %118, %119 : vector<2x32xf32>
    %cst_89 = arith.constant dense<0.000000e+00> : vector<2x32xf32>
    %121 = tpu.matmul %113, %5, %cst_89 {dimension_numbers = #tpu.dot_dimension_numbers<[1], [0], [0], [1], [0, 0, 1, 1], [], []>} : vector<2x32xf32>, vector<32x32xf32>, vector<2x32xf32> -> vector<2x32xf32>
    %122 = arith.addf %109, %121 : vector<2x32xf32>
    %123 = arith.negf %122 : vector<2x32xf32>
    %124 = math.exp %123 : vector<2x32xf32>
    %cst_90 = arith.constant 1.000000e+00 : f32
    %125 = vector.broadcast %cst_90 : f32 to vector<2x32xf32>
    %126 = arith.addf %125, %124 : vector<2x32xf32>
    %127 = arith.divf %125, %126 : vector<2x32xf32>
    %cst_91 = arith.constant dense<0.000000e+00> : vector<2x32xf32>
    %128 = tpu.matmul %113, %9, %cst_91 {dimension_numbers = #tpu.dot_dimension_numbers<[1], [0], [0], [1], [0, 0, 1, 1], [], []>} : vector<2x32xf32>, vector<32x32xf32>, vector<2x32xf32> -> vector<2x32xf32>
    %129 = vector.broadcast %13 : vector<1x32xf32> to vector<2x32xf32>
    %130 = arith.addf %128, %129 : vector<2x32xf32>
    %131 = arith.mulf %120, %130 : vector<2x32xf32>
    %132 = arith.addf %112, %131 : vector<2x32xf32>
    %133 = math.tanh %132 : vector<2x32xf32>
    %cst_92 = arith.constant 1.000000e+00 : f32
    %134 = vector.broadcast %cst_92 : f32 to vector<2x32xf32>
    %135 = arith.subf %134, %127 : vector<2x32xf32>
    %136 = arith.mulf %135, %133 : vector<2x32xf32>
    %137 = arith.mulf %127, %113 : vector<2x32xf32>
    %138 = arith.addf %136, %137 : vector<2x32xf32>
    %c1_93 = arith.constant 1 : index
    %139 = arith.index_cast %103 : i32 to index
    %c0_94 = arith.constant 0 : index
    %c0_95 = arith.constant 0 : index
    %140 = vector.load %arg0[%c1_93, %139, %c0_94, %c0_95] : memref<2x8x2x32xf32, #tpu.memory_space<vmem>>, vector<1x1x2x32xf32>
    %141 = vector.shape_cast %140 : vector<1x1x2x32xf32> to vector<2x32xf32>
    %c1_96 = arith.constant 1 : index
    %142 = arith.index_cast %103 : i32 to index
    %c0_97 = arith.constant 0 : index
    %c0_98 = arith.constant 0 : index
    %143 = vector.load %arg1[%c1_96, %142, %c0_97, %c0_98] : memref<2x8x2x32xf32, #tpu.memory_space<vmem>>, vector<1x1x2x32xf32>
    %144 = vector.shape_cast %143 : vector<1x1x2x32xf32> to vector<2x32xf32>
    %c1_99 = arith.constant 1 : index
    %145 = arith.index_cast %103 : i32 to index
    %c0_100 = arith.constant 0 : index
    %c0_101 = arith.constant 0 : index
    %146 = vector.load %arg2[%c1_99, %145, %c0_100, %c0_101] : memref<2x8x2x32xf32, #tpu.memory_space<vmem>>, vector<1x1x2x32xf32>
    %147 = vector.shape_cast %146 : vector<1x1x2x32xf32> to vector<2x32xf32>
    %c0_102 = arith.constant 0 : index
    %c0_103 = arith.constant 0 : index
    %148 = vector.load %arg10[%c0_102, %c0_103] : memref<2x32xf32, #tpu.memory_space<vmem>>, vector<2x32xf32>
    %cst_104 = arith.constant dense<0.000000e+00> : vector<2x32xf32>
    %149 = tpu.matmul %148, %3, %cst_104 {dimension_numbers = #tpu.dot_dimension_numbers<[1], [0], [0], [1], [0, 0, 1, 1], [], []>} : vector<2x32xf32>, vector<32x32xf32>, vector<2x32xf32> -> vector<2x32xf32>
    %150 = arith.addf %141, %149 : vector<2x32xf32>
    %151 = arith.negf %150 : vector<2x32xf32>
    %152 = math.exp %151 : vector<2x32xf32>
    %cst_105 = arith.constant 1.000000e+00 : f32
    %153 = vector.broadcast %cst_105 : f32 to vector<2x32xf32>
    %154 = arith.addf %153, %152 : vector<2x32xf32>
    %155 = arith.divf %153, %154 : vector<2x32xf32>
    %cst_106 = arith.constant dense<0.000000e+00> : vector<2x32xf32>
    %156 = tpu.matmul %148, %7, %cst_106 {dimension_numbers = #tpu.dot_dimension_numbers<[1], [0], [0], [1], [0, 0, 1, 1], [], []>} : vector<2x32xf32>, vector<32x32xf32>, vector<2x32xf32> -> vector<2x32xf32>
    %157 = arith.addf %144, %156 : vector<2x32xf32>
    %158 = arith.negf %157 : vector<2x32xf32>
    %159 = math.exp %158 : vector<2x32xf32>
    %cst_107 = arith.constant 1.000000e+00 : f32
    %160 = vector.broadcast %cst_107 : f32 to vector<2x32xf32>
    %161 = arith.addf %160, %159 : vector<2x32xf32>
    %162 = arith.divf %160, %161 : vector<2x32xf32>
    %cst_108 = arith.constant dense<0.000000e+00> : vector<2x32xf32>
    %163 = tpu.matmul %148, %11, %cst_108 {dimension_numbers = #tpu.dot_dimension_numbers<[1], [0], [0], [1], [0, 0, 1, 1], [], []>} : vector<2x32xf32>, vector<32x32xf32>, vector<2x32xf32> -> vector<2x32xf32>
    %164 = vector.broadcast %15 : vector<1x32xf32> to vector<2x32xf32>
    %165 = arith.addf %163, %164 : vector<2x32xf32>
    %166 = arith.mulf %155, %165 : vector<2x32xf32>
    %167 = arith.addf %147, %166 : vector<2x32xf32>
    %168 = math.tanh %167 : vector<2x32xf32>
    %cst_109 = arith.constant 1.000000e+00 : f32
    %169 = vector.broadcast %cst_109 : f32 to vector<2x32xf32>
    %170 = arith.subf %169, %162 : vector<2x32xf32>
    %171 = arith.mulf %170, %168 : vector<2x32xf32>
    %172 = arith.mulf %162, %148 : vector<2x32xf32>
    %173 = arith.addf %171, %172 : vector<2x32xf32>
    %c0_110 = arith.constant 0 : index
    %c0_111 = arith.constant 0 : index
    %174 = vector.load %arg9[%c0_110, %c0_111] : memref<2x32xf32, #tpu.memory_space<vmem>>, vector<2x32xf32>
    tpu.vector_store %arg9[%c0_110, %c0_111], %138 {strides = array<i32>} : memref<2x32xf32, #tpu.memory_space<vmem>>, vector<2x32xf32>,
    %c0_112 = arith.constant 0 : index
    %c0_113 = arith.constant 0 : index
    %175 = vector.load %arg10[%c0_112, %c0_113] : memref<2x32xf32, #tpu.memory_space<vmem>>, vector<2x32xf32>
    tpu.vector_store %arg10[%c0_112, %c0_113], %173 {strides = array<i32>} : memref<2x32xf32, #tpu.memory_space<vmem>>, vector<2x32xf32>,
    %c0_114 = arith.constant 0 : index
    %176 = arith.index_cast %c1_i32 : i32 to index
    %c0_115 = arith.constant 0 : index
    %c0_116 = arith.constant 0 : index
    %177 = vector.load %arg8[%c0_114, %176, %c0_115, %c0_116] : memref<2x8x2x32xf32, #tpu.memory_space<vmem>>, vector<1x1x2x32xf32>
    %178 = vector.shape_cast %177 : vector<1x1x2x32xf32> to vector<2x32xf32>
    %179 = vector.shape_cast %138 : vector<2x32xf32> to vector<1x1x2x32xf32>
    tpu.vector_store %arg8[%c0_114, %176, %c0_115, %c0_116], %179 {strides = array<i32>} : memref<2x8x2x32xf32, #tpu.memory_space<vmem>>, vector<1x1x2x32xf32>,
    %c1_117 = arith.constant 1 : index
    %180 = arith.index_cast %103 : i32 to index
    %c0_118 = arith.constant 0 : index
    %c0_119 = arith.constant 0 : index
    %181 = vector.load %arg8[%c1_117, %180, %c0_118, %c0_119] : memref<2x8x2x32xf32, #tpu.memory_space<vmem>>, vector<1x1x2x32xf32>
    %182 = vector.shape_cast %181 : vector<1x1x2x32xf32> to vector<2x32xf32>
    %183 = vector.shape_cast %173 : vector<2x32xf32> to vector<1x1x2x32xf32>
    tpu.vector_store %arg8[%c1_117, %180, %c0_118, %c0_119], %183 {strides = array<i32>} : memref<2x8x2x32xf32, #tpu.memory_space<vmem>>, vector<1x1x2x32xf32>,
    %c2_i32 = arith.constant 2 : i32
    %c7_i32_120 = arith.constant 7 : i32
    %184 = arith.subi %c7_i32_120, %c2_i32 : i32
    %c0_121 = arith.constant 0 : index
    %185 = arith.index_cast %c2_i32 : i32 to index
    %c0_122 = arith.constant 0 : index
    %c0_123 = arith.constant 0 : index
    %186 = vector.load %arg0[%c0_121, %185, %c0_122, %c0_123] : memref<2x8x2x32xf32, #tpu.memory_space<vmem>>, vector<1x1x2x32xf32>
    %187 = vector.shape_cast %186 : vector<1x1x2x32xf32> to vector<2x32xf32>
    %c0_124 = arith.constant 0 : index
    %188 = arith.index_cast %c2_i32 : i32 to index
    %c0_125 = arith.constant 0 : index
    %c0_126 = arith.constant 0 : index
    %189 = vector.load %arg1[%c0_124, %188, %c0_125, %c0_126] : memref<2x8x2x32xf32, #tpu.memory_space<vmem>>, vector<1x1x2x32xf32>
    %190 = vector.shape_cast %189 : vector<1x1x2x32xf32> to vector<2x32xf32>
    %c0_127 = arith.constant 0 : index
    %191 = arith.index_cast %c2_i32 : i32 to index
    %c0_128 = arith.constant 0 : index
    %c0_129 = arith.constant 0 : index
    %192 = vector.load %arg2[%c0_127, %191, %c0_128, %c0_129] : memref<2x8x2x32xf32, #tpu.memory_space<vmem>>, vector<1x1x2x32xf32>
    %193 = vector.shape_cast %192 : vector<1x1x2x32xf32> to vector<2x32xf32>
    %c0_130 = arith.constant 0 : index
    %c0_131 = arith.constant 0 : index
    %194 = vector.load %arg9[%c0_130, %c0_131] : memref<2x32xf32, #tpu.memory_space<vmem>>, vector<2x32xf32>
    %cst_132 = arith.constant dense<0.000000e+00> : vector<2x32xf32>
    %195 = tpu.matmul %194, %1, %cst_132 {dimension_numbers = #tpu.dot_dimension_numbers<[1], [0], [0], [1], [0, 0, 1, 1], [], []>} : vector<2x32xf32>, vector<32x32xf32>, vector<2x32xf32> -> vector<2x32xf32>
    %196 = arith.addf %187, %195 : vector<2x32xf32>
    %197 = arith.negf %196 : vector<2x32xf32>
    %198 = math.exp %197 : vector<2x32xf32>
    %cst_133 = arith.constant 1.000000e+00 : f32
    %199 = vector.broadcast %cst_133 : f32 to vector<2x32xf32>
    %200 = arith.addf %199, %198 : vector<2x32xf32>
    %201 = arith.divf %199, %200 : vector<2x32xf32>
    %cst_134 = arith.constant dense<0.000000e+00> : vector<2x32xf32>
    %202 = tpu.matmul %194, %5, %cst_134 {dimension_numbers = #tpu.dot_dimension_numbers<[1], [0], [0], [1], [0, 0, 1, 1], [], []>} : vector<2x32xf32>, vector<32x32xf32>, vector<2x32xf32> -> vector<2x32xf32>
    %203 = arith.addf %190, %202 : vector<2x32xf32>
    %204 = arith.negf %203 : vector<2x32xf32>
    %205 = math.exp %204 : vector<2x32xf32>
    %cst_135 = arith.constant 1.000000e+00 : f32
    %206 = vector.broadcast %cst_135 : f32 to vector<2x32xf32>
    %207 = arith.addf %206, %205 : vector<2x32xf32>
    %208 = arith.divf %206, %207 : vector<2x32xf32>
    %cst_136 = arith.constant dense<0.000000e+00> : vector<2x32xf32>
    %209 = tpu.matmul %194, %9, %cst_136 {dimension_numbers = #tpu.dot_dimension_numbers<[1], [0], [0], [1], [0, 0, 1, 1], [], []>} : vector<2x32xf32>, vector<32x32xf32>, vector<2x32xf32> -> vector<2x32xf32>
    %210 = vector.broadcast %13 : vector<1x32xf32> to vector<2x32xf32>
    %211 = arith.addf %209, %210 : vector<2x32xf32>
    %212 = arith.mulf %201, %211 : vector<2x32xf32>
    %213 = arith.addf %193, %212 : vector<2x32xf32>
    %214 = math.tanh %213 : vector<2x32xf32>
    %cst_137 = arith.constant 1.000000e+00 : f32
    %215 = vector.broadcast %cst_137 : f32 to vector<2x32xf32>
    %216 = arith.subf %215, %208 : vector<2x32xf32>
    %217 = arith.mulf %216, %214 : vector<2x32xf32>
    %218 = arith.mulf %208, %194 : vector<2x32xf32>
    %219 = arith.addf %217, %218 : vector<2x32xf32>
    %c1_138 = arith.constant 1 : index
    %220 = arith.index_cast %184 : i32 to index
    %c0_139 = arith.constant 0 : index
    %c0_140 = arith.constant 0 : index
    %221 = vector.load %arg0[%c1_138, %220, %c0_139, %c0_140] : memref<2x8x2x32xf32, #tpu.memory_space<vmem>>, vector<1x1x2x32xf32>
    %222 = vector.shape_cast %221 : vector<1x1x2x32xf32> to vector<2x32xf32>
    %c1_141 = arith.constant 1 : index
    %223 = arith.index_cast %184 : i32 to index
    %c0_142 = arith.constant 0 : index
    %c0_143 = arith.constant 0 : index
    %224 = vector.load %arg1[%c1_141, %223, %c0_142, %c0_143] : memref<2x8x2x32xf32, #tpu.memory_space<vmem>>, vector<1x1x2x32xf32>
    %225 = vector.shape_cast %224 : vector<1x1x2x32xf32> to vector<2x32xf32>
    %c1_144 = arith.constant 1 : index
    %226 = arith.index_cast %184 : i32 to index
    %c0_145 = arith.constant 0 : index
    %c0_146 = arith.constant 0 : index
    %227 = vector.load %arg2[%c1_144, %226, %c0_145, %c0_146] : memref<2x8x2x32xf32, #tpu.memory_space<vmem>>, vector<1x1x2x32xf32>
    %228 = vector.shape_cast %227 : vector<1x1x2x32xf32> to vector<2x32xf32>
    %c0_147 = arith.constant 0 : index
    %c0_148 = arith.constant 0 : index
    %229 = vector.load %arg10[%c0_147, %c0_148] : memref<2x32xf32, #tpu.memory_space<vmem>>, vector<2x32xf32>
    %cst_149 = arith.constant dense<0.000000e+00> : vector<2x32xf32>
    %230 = tpu.matmul %229, %3, %cst_149 {dimension_numbers = #tpu.dot_dimension_numbers<[1], [0], [0], [1], [0, 0, 1, 1], [], []>} : vector<2x32xf32>, vector<32x32xf32>, vector<2x32xf32> -> vector<2x32xf32>
    %231 = arith.addf %222, %230 : vector<2x32xf32>
    %232 = arith.negf %231 : vector<2x32xf32>
    %233 = math.exp %232 : vector<2x32xf32>
    %cst_150 = arith.constant 1.000000e+00 : f32
    %234 = vector.broadcast %cst_150 : f32 to vector<2x32xf32>
    %235 = arith.addf %234, %233 : vector<2x32xf32>
    %236 = arith.divf %234, %235 : vector<2x32xf32>
    %cst_151 = arith.constant dense<0.000000e+00> : vector<2x32xf32>
    %237 = tpu.matmul %229, %7, %cst_151 {dimension_numbers = #tpu.dot_dimension_numbers<[1], [0], [0], [1], [0, 0, 1, 1], [], []>} : vector<2x32xf32>, vector<32x32xf32>, vector<2x32xf32> -> vector<2x32xf32>
    %238 = arith.addf %225, %237 : vector<2x32xf32>
    %239 = arith.negf %238 : vector<2x32xf32>
    %240 = math.exp %239 : vector<2x32xf32>
    %cst_152 = arith.constant 1.000000e+00 : f32
    %241 = vector.broadcast %cst_152 : f32 to vector<2x32xf32>
    %242 = arith.addf %241, %240 : vector<2x32xf32>
    %243 = arith.divf %241, %242 : vector<2x32xf32>
    %cst_153 = arith.constant dense<0.000000e+00> : vector<2x32xf32>
    %244 = tpu.matmul %229, %11, %cst_153 {dimension_numbers = #tpu.dot_dimension_numbers<[1], [0], [0], [1], [0, 0, 1, 1], [], []>} : vector<2x32xf32>, vector<32x32xf32>, vector<2x32xf32> -> vector<2x32xf32>
    %245 = vector.broadcast %15 : vector<1x32xf32> to vector<2x32xf32>
    %246 = arith.addf %244, %245 : vector<2x32xf32>
    %247 = arith.mulf %236, %246 : vector<2x32xf32>
    %248 = arith.addf %228, %247 : vector<2x32xf32>
    %249 = math.tanh %248 : vector<2x32xf32>
    %cst_154 = arith.constant 1.000000e+00 : f32
    %250 = vector.broadcast %cst_154 : f32 to vector<2x32xf32>
    %251 = arith.subf %250, %243 : vector<2x32xf32>
    %252 = arith.mulf %251, %249 : vector<2x32xf32>
    %253 = arith.mulf %243, %229 : vector<2x32xf32>
    %254 = arith.addf %252, %253 : vector<2x32xf32>
    %c0_155 = arith.constant 0 : index
    %c0_156 = arith.constant 0 : index
    %255 = vector.load %arg9[%c0_155, %c0_156] : memref<2x32xf32, #tpu.memory_space<vmem>>, vector<2x32xf32>
    tpu.vector_store %arg9[%c0_155, %c0_156], %219 {strides = array<i32>} : memref<2x32xf32, #tpu.memory_space<vmem>>, vector<2x32xf32>,
    %c0_157 = arith.constant 0 : index
    %c0_158 = arith.constant 0 : index
    %256 = vector.load %arg10[%c0_157, %c0_158] : memref<2x32xf32, #tpu.memory_space<vmem>>, vector<2x32xf32>
    tpu.vector_store %arg10[%c0_157, %c0_158], %254 {strides = array<i32>} : memref<2x32xf32, #tpu.memory_space<vmem>>, vector<2x32xf32>,
    %c0_159 = arith.constant 0 : index
    %257 = arith.index_cast %c2_i32 : i32 to index
    %c0_160 = arith.constant 0 : index
    %c0_161 = arith.constant 0 : index
    %258 = vector.load %arg8[%c0_159, %257, %c0_160, %c0_161] : memref<2x8x2x32xf32, #tpu.memory_space<vmem>>, vector<1x1x2x32xf32>
    %259 = vector.shape_cast %258 : vector<1x1x2x32xf32> to vector<2x32xf32>
    %260 = vector.shape_cast %219 : vector<2x32xf32> to vector<1x1x2x32xf32>
    tpu.vector_store %arg8[%c0_159, %257, %c0_160, %c0_161], %260 {strides = array<i32>} : memref<2x8x2x32xf32, #tpu.memory_space<vmem>>, vector<1x1x2x32xf32>,
    %c1_162 = arith.constant 1 : index
    %261 = arith.index_cast %184 : i32 to index
    %c0_163 = arith.constant 0 : index
    %c0_164 = arith.constant 0 : index
    %262 = vector.load %arg8[%c1_162, %261, %c0_163, %c0_164] : memref<2x8x2x32xf32, #tpu.memory_space<vmem>>, vector<1x1x2x32xf32>
    %263 = vector.shape_cast %262 : vector<1x1x2x32xf32> to vector<2x32xf32>
    %264 = vector.shape_cast %254 : vector<2x32xf32> to vector<1x1x2x32xf32>
    tpu.vector_store %arg8[%c1_162, %261, %c0_163, %c0_164], %264 {strides = array<i32>} : memref<2x8x2x32xf32, #tpu.memory_space<vmem>>, vector<1x1x2x32xf32>,
    %c3_i32 = arith.constant 3 : i32
    %c7_i32_165 = arith.constant 7 : i32
    %265 = arith.subi %c7_i32_165, %c3_i32 : i32
    %c0_166 = arith.constant 0 : index
    %266 = arith.index_cast %c3_i32 : i32 to index
    %c0_167 = arith.constant 0 : index
    %c0_168 = arith.constant 0 : index
    %267 = vector.load %arg0[%c0_166, %266, %c0_167, %c0_168] : memref<2x8x2x32xf32, #tpu.memory_space<vmem>>, vector<1x1x2x32xf32>
    %268 = vector.shape_cast %267 : vector<1x1x2x32xf32> to vector<2x32xf32>
    %c0_169 = arith.constant 0 : index
    %269 = arith.index_cast %c3_i32 : i32 to index
    %c0_170 = arith.constant 0 : index
    %c0_171 = arith.constant 0 : index
    %270 = vector.load %arg1[%c0_169, %269, %c0_170, %c0_171] : memref<2x8x2x32xf32, #tpu.memory_space<vmem>>, vector<1x1x2x32xf32>
    %271 = vector.shape_cast %270 : vector<1x1x2x32xf32> to vector<2x32xf32>
    %c0_172 = arith.constant 0 : index
    %272 = arith.index_cast %c3_i32 : i32 to index
    %c0_173 = arith.constant 0 : index
    %c0_174 = arith.constant 0 : index
    %273 = vector.load %arg2[%c0_172, %272, %c0_173, %c0_174] : memref<2x8x2x32xf32, #tpu.memory_space<vmem>>, vector<1x1x2x32xf32>
    %274 = vector.shape_cast %273 : vector<1x1x2x32xf32> to vector<2x32xf32>
    %c0_175 = arith.constant 0 : index
    %c0_176 = arith.constant 0 : index
    %275 = vector.load %arg9[%c0_175, %c0_176] : memref<2x32xf32, #tpu.memory_space<vmem>>, vector<2x32xf32>
    %cst_177 = arith.constant dense<0.000000e+00> : vector<2x32xf32>
    %276 = tpu.matmul %275, %1, %cst_177 {dimension_numbers = #tpu.dot_dimension_numbers<[1], [0], [0], [1], [0, 0, 1, 1], [], []>} : vector<2x32xf32>, vector<32x32xf32>, vector<2x32xf32> -> vector<2x32xf32>
    %277 = arith.addf %268, %276 : vector<2x32xf32>
    %278 = arith.negf %277 : vector<2x32xf32>
    %279 = math.exp %278 : vector<2x32xf32>
    %cst_178 = arith.constant 1.000000e+00 : f32
    %280 = vector.broadcast %cst_178 : f32 to vector<2x32xf32>
    %281 = arith.addf %280, %279 : vector<2x32xf32>
    %282 = arith.divf %280, %281 : vector<2x32xf32>
    %cst_179 = arith.constant dense<0.000000e+00> : vector<2x32xf32>
    %283 = tpu.matmul %275, %5, %cst_179 {dimension_numbers = #tpu.dot_dimension_numbers<[1], [0], [0], [1], [0, 0, 1, 1], [], []>} : vector<2x32xf32>, vector<32x32xf32>, vector<2x32xf32> -> vector<2x32xf32>
    %284 = arith.addf %271, %283 : vector<2x32xf32>
    %285 = arith.negf %284 : vector<2x32xf32>
    %286 = math.exp %285 : vector<2x32xf32>
    %cst_180 = arith.constant 1.000000e+00 : f32
    %287 = vector.broadcast %cst_180 : f32 to vector<2x32xf32>
    %288 = arith.addf %287, %286 : vector<2x32xf32>
    %289 = arith.divf %287, %288 : vector<2x32xf32>
    %cst_181 = arith.constant dense<0.000000e+00> : vector<2x32xf32>
    %290 = tpu.matmul %275, %9, %cst_181 {dimension_numbers = #tpu.dot_dimension_numbers<[1], [0], [0], [1], [0, 0, 1, 1], [], []>} : vector<2x32xf32>, vector<32x32xf32>, vector<2x32xf32> -> vector<2x32xf32>
    %291 = vector.broadcast %13 : vector<1x32xf32> to vector<2x32xf32>
    %292 = arith.addf %290, %291 : vector<2x32xf32>
    %293 = arith.mulf %282, %292 : vector<2x32xf32>
    %294 = arith.addf %274, %293 : vector<2x32xf32>
    %295 = math.tanh %294 : vector<2x32xf32>
    %cst_182 = arith.constant 1.000000e+00 : f32
    %296 = vector.broadcast %cst_182 : f32 to vector<2x32xf32>
    %297 = arith.subf %296, %289 : vector<2x32xf32>
    %298 = arith.mulf %297, %295 : vector<2x32xf32>
    %299 = arith.mulf %289, %275 : vector<2x32xf32>
    %300 = arith.addf %298, %299 : vector<2x32xf32>
    %c1_183 = arith.constant 1 : index
    %301 = arith.index_cast %265 : i32 to index
    %c0_184 = arith.constant 0 : index
    %c0_185 = arith.constant 0 : index
    %302 = vector.load %arg0[%c1_183, %301, %c0_184, %c0_185] : memref<2x8x2x32xf32, #tpu.memory_space<vmem>>, vector<1x1x2x32xf32>
    %303 = vector.shape_cast %302 : vector<1x1x2x32xf32> to vector<2x32xf32>
    %c1_186 = arith.constant 1 : index
    %304 = arith.index_cast %265 : i32 to index
    %c0_187 = arith.constant 0 : index
    %c0_188 = arith.constant 0 : index
    %305 = vector.load %arg1[%c1_186, %304, %c0_187, %c0_188] : memref<2x8x2x32xf32, #tpu.memory_space<vmem>>, vector<1x1x2x32xf32>
    %306 = vector.shape_cast %305 : vector<1x1x2x32xf32> to vector<2x32xf32>
    %c1_189 = arith.constant 1 : index
    %307 = arith.index_cast %265 : i32 to index
    %c0_190 = arith.constant 0 : index
    %c0_191 = arith.constant 0 : index
    %308 = vector.load %arg2[%c1_189, %307, %c0_190, %c0_191] : memref<2x8x2x32xf32, #tpu.memory_space<vmem>>, vector<1x1x2x32xf32>
    %309 = vector.shape_cast %308 : vector<1x1x2x32xf32> to vector<2x32xf32>
    %c0_192 = arith.constant 0 : index
    %c0_193 = arith.constant 0 : index
    %310 = vector.load %arg10[%c0_192, %c0_193] : memref<2x32xf32, #tpu.memory_space<vmem>>, vector<2x32xf32>
    %cst_194 = arith.constant dense<0.000000e+00> : vector<2x32xf32>
    %311 = tpu.matmul %310, %3, %cst_194 {dimension_numbers = #tpu.dot_dimension_numbers<[1], [0], [0], [1], [0, 0, 1, 1], [], []>} : vector<2x32xf32>, vector<32x32xf32>, vector<2x32xf32> -> vector<2x32xf32>
    %312 = arith.addf %303, %311 : vector<2x32xf32>
    %313 = arith.negf %312 : vector<2x32xf32>
    %314 = math.exp %313 : vector<2x32xf32>
    %cst_195 = arith.constant 1.000000e+00 : f32
    %315 = vector.broadcast %cst_195 : f32 to vector<2x32xf32>
    %316 = arith.addf %315, %314 : vector<2x32xf32>
    %317 = arith.divf %315, %316 : vector<2x32xf32>
    %cst_196 = arith.constant dense<0.000000e+00> : vector<2x32xf32>
    %318 = tpu.matmul %310, %7, %cst_196 {dimension_numbers = #tpu.dot_dimension_numbers<[1], [0], [0], [1], [0, 0, 1, 1], [], []>} : vector<2x32xf32>, vector<32x32xf32>, vector<2x32xf32> -> vector<2x32xf32>
    %319 = arith.addf %306, %318 : vector<2x32xf32>
    %320 = arith.negf %319 : vector<2x32xf32>
    %321 = math.exp %320 : vector<2x32xf32>
    %cst_197 = arith.constant 1.000000e+00 : f32
    %322 = vector.broadcast %cst_197 : f32 to vector<2x32xf32>
    %323 = arith.addf %322, %321 : vector<2x32xf32>
    %324 = arith.divf %322, %323 : vector<2x32xf32>
    %cst_198 = arith.constant dense<0.000000e+00> : vector<2x32xf32>
    %325 = tpu.matmul %310, %11, %cst_198 {dimension_numbers = #tpu.dot_dimension_numbers<[1], [0], [0], [1], [0, 0, 1, 1], [], []>} : vector<2x32xf32>, vector<32x32xf32>, vector<2x32xf32> -> vector<2x32xf32>
    %326 = vector.broadcast %15 : vector<1x32xf32> to vector<2x32xf32>
    %327 = arith.addf %325, %326 : vector<2x32xf32>
    %328 = arith.mulf %317, %327 : vector<2x32xf32>
    %329 = arith.addf %309, %328 : vector<2x32xf32>
    %330 = math.tanh %329 : vector<2x32xf32>
    %cst_199 = arith.constant 1.000000e+00 : f32
    %331 = vector.broadcast %cst_199 : f32 to vector<2x32xf32>
    %332 = arith.subf %331, %324 : vector<2x32xf32>
    %333 = arith.mulf %332, %330 : vector<2x32xf32>
    %334 = arith.mulf %324, %310 : vector<2x32xf32>
    %335 = arith.addf %333, %334 : vector<2x32xf32>
    %c0_200 = arith.constant 0 : index
    %c0_201 = arith.constant 0 : index
    %336 = vector.load %arg9[%c0_200, %c0_201] : memref<2x32xf32, #tpu.memory_space<vmem>>, vector<2x32xf32>
    tpu.vector_store %arg9[%c0_200, %c0_201], %300 {strides = array<i32>} : memref<2x32xf32, #tpu.memory_space<vmem>>, vector<2x32xf32>,
    %c0_202 = arith.constant 0 : index
    %c0_203 = arith.constant 0 : index
    %337 = vector.load %arg10[%c0_202, %c0_203] : memref<2x32xf32, #tpu.memory_space<vmem>>, vector<2x32xf32>
    tpu.vector_store %arg10[%c0_202, %c0_203], %335 {strides = array<i32>} : memref<2x32xf32, #tpu.memory_space<vmem>>, vector<2x32xf32>,
    %c0_204 = arith.constant 0 : index
    %338 = arith.index_cast %c3_i32 : i32 to index
    %c0_205 = arith.constant 0 : index
    %c0_206 = arith.constant 0 : index
    %339 = vector.load %arg8[%c0_204, %338, %c0_205, %c0_206] : memref<2x8x2x32xf32, #tpu.memory_space<vmem>>, vector<1x1x2x32xf32>
    %340 = vector.shape_cast %339 : vector<1x1x2x32xf32> to vector<2x32xf32>
    %341 = vector.shape_cast %300 : vector<2x32xf32> to vector<1x1x2x32xf32>
    tpu.vector_store %arg8[%c0_204, %338, %c0_205, %c0_206], %341 {strides = array<i32>} : memref<2x8x2x32xf32, #tpu.memory_space<vmem>>, vector<1x1x2x32xf32>,
    %c1_207 = arith.constant 1 : index
    %342 = arith.index_cast %265 : i32 to index
    %c0_208 = arith.constant 0 : index
    %c0_209 = arith.constant 0 : index
    %343 = vector.load %arg8[%c1_207, %342, %c0_208, %c0_209] : memref<2x8x2x32xf32, #tpu.memory_space<vmem>>, vector<1x1x2x32xf32>
    %344 = vector.shape_cast %343 : vector<1x1x2x32xf32> to vector<2x32xf32>
    %345 = vector.shape_cast %335 : vector<2x32xf32> to vector<1x1x2x32xf32>
    tpu.vector_store %arg8[%c1_207, %342, %c0_208, %c0_209], %345 {strides = array<i32>} : memref<2x8x2x32xf32, #tpu.memory_space<vmem>>, vector<1x1x2x32xf32>,
    %c4_i32 = arith.constant 4 : i32
    %c7_i32_210 = arith.constant 7 : i32
    %346 = arith.subi %c7_i32_210, %c4_i32 : i32
    %c0_211 = arith.constant 0 : index
    %347 = arith.index_cast %c4_i32 : i32 to index
    %c0_212 = arith.constant 0 : index
    %c0_213 = arith.constant 0 : index
    %348 = vector.load %arg0[%c0_211, %347, %c0_212, %c0_213] : memref<2x8x2x32xf32, #tpu.memory_space<vmem>>, vector<1x1x2x32xf32>
    %349 = vector.shape_cast %348 : vector<1x1x2x32xf32> to vector<2x32xf32>
    %c0_214 = arith.constant 0 : index
    %350 = arith.index_cast %c4_i32 : i32 to index
    %c0_215 = arith.constant 0 : index
    %c0_216 = arith.constant 0 : index
    %351 = vector.load %arg1[%c0_214, %350, %c0_215, %c0_216] : memref<2x8x2x32xf32, #tpu.memory_space<vmem>>, vector<1x1x2x32xf32>
    %352 = vector.shape_cast %351 : vector<1x1x2x32xf32> to vector<2x32xf32>
    %c0_217 = arith.constant 0 : index
    %353 = arith.index_cast %c4_i32 : i32 to index
    %c0_218 = arith.constant 0 : index
    %c0_219 = arith.constant 0 : index
    %354 = vector.load %arg2[%c0_217, %353, %c0_218, %c0_219] : memref<2x8x2x32xf32, #tpu.memory_space<vmem>>, vector<1x1x2x32xf32>
    %355 = vector.shape_cast %354 : vector<1x1x2x32xf32> to vector<2x32xf32>
    %c0_220 = arith.constant 0 : index
    %c0_221 = arith.constant 0 : index
    %356 = vector.load %arg9[%c0_220, %c0_221] : memref<2x32xf32, #tpu.memory_space<vmem>>, vector<2x32xf32>
    %cst_222 = arith.constant dense<0.000000e+00> : vector<2x32xf32>
    %357 = tpu.matmul %356, %1, %cst_222 {dimension_numbers = #tpu.dot_dimension_numbers<[1], [0], [0], [1], [0, 0, 1, 1], [], []>} : vector<2x32xf32>, vector<32x32xf32>, vector<2x32xf32> -> vector<2x32xf32>
    %358 = arith.addf %349, %357 : vector<2x32xf32>
    %359 = arith.negf %358 : vector<2x32xf32>
    %360 = math.exp %359 : vector<2x32xf32>
    %cst_223 = arith.constant 1.000000e+00 : f32
    %361 = vector.broadcast %cst_223 : f32 to vector<2x32xf32>
    %362 = arith.addf %361, %360 : vector<2x32xf32>
    %363 = arith.divf %361, %362 : vector<2x32xf32>
    %cst_224 = arith.constant dense<0.000000e+00> : vector<2x32xf32>
    %364 = tpu.matmul %356, %5, %cst_224 {dimension_numbers = #tpu.dot_dimension_numbers<[1], [0], [0], [1], [0, 0, 1, 1], [], []>} : vector<2x32xf32>, vector<32x32xf32>, vector<2x32xf32> -> vector<2x32xf32>
    %365 = arith.addf %352, %364 : vector<2x32xf32>
    %366 = arith.negf %365 : vector<2x32xf32>
    %367 = math.exp %366 : vector<2x32xf32>
    %cst_225 = arith.constant 1.000000e+00 : f32
    %368 = vector.broadcast %cst_225 : f32 to vector<2x32xf32>
    %369 = arith.addf %368, %367 : vector<2x32xf32>
    %370 = arith.divf %368, %369 : vector<2x32xf32>
    %cst_226 = arith.constant dense<0.000000e+00> : vector<2x32xf32>
    %371 = tpu.matmul %356, %9, %cst_226 {dimension_numbers = #tpu.dot_dimension_numbers<[1], [0], [0], [1], [0, 0, 1, 1], [], []>} : vector<2x32xf32>, vector<32x32xf32>, vector<2x32xf32> -> vector<2x32xf32>
    %372 = vector.broadcast %13 : vector<1x32xf32> to vector<2x32xf32>
    %373 = arith.addf %371, %372 : vector<2x32xf32>
    %374 = arith.mulf %363, %373 : vector<2x32xf32>
    %375 = arith.addf %355, %374 : vector<2x32xf32>
    %376 = math.tanh %375 : vector<2x32xf32>
    %cst_227 = arith.constant 1.000000e+00 : f32
    %377 = vector.broadcast %cst_227 : f32 to vector<2x32xf32>
    %378 = arith.subf %377, %370 : vector<2x32xf32>
    %379 = arith.mulf %378, %376 : vector<2x32xf32>
    %380 = arith.mulf %370, %356 : vector<2x32xf32>
    %381 = arith.addf %379, %380 : vector<2x32xf32>
    %c1_228 = arith.constant 1 : index
    %382 = arith.index_cast %346 : i32 to index
    %c0_229 = arith.constant 0 : index
    %c0_230 = arith.constant 0 : index
    %383 = vector.load %arg0[%c1_228, %382, %c0_229, %c0_230] : memref<2x8x2x32xf32, #tpu.memory_space<vmem>>, vector<1x1x2x32xf32>
    %384 = vector.shape_cast %383 : vector<1x1x2x32xf32> to vector<2x32xf32>
    %c1_231 = arith.constant 1 : index
    %385 = arith.index_cast %346 : i32 to index
    %c0_232 = arith.constant 0 : index
    %c0_233 = arith.constant 0 : index
    %386 = vector.load %arg1[%c1_231, %385, %c0_232, %c0_233] : memref<2x8x2x32xf32, #tpu.memory_space<vmem>>, vector<1x1x2x32xf32>
    %387 = vector.shape_cast %386 : vector<1x1x2x32xf32> to vector<2x32xf32>
    %c1_234 = arith.constant 1 : index
    %388 = arith.index_cast %346 : i32 to index
    %c0_235 = arith.constant 0 : index
    %c0_236 = arith.constant 0 : index
    %389 = vector.load %arg2[%c1_234, %388, %c0_235, %c0_236] : memref<2x8x2x32xf32, #tpu.memory_space<vmem>>, vector<1x1x2x32xf32>
    %390 = vector.shape_cast %389 : vector<1x1x2x32xf32> to vector<2x32xf32>
    %c0_237 = arith.constant 0 : index
    %c0_238 = arith.constant 0 : index
    %391 = vector.load %arg10[%c0_237, %c0_238] : memref<2x32xf32, #tpu.memory_space<vmem>>, vector<2x32xf32>
    %cst_239 = arith.constant dense<0.000000e+00> : vector<2x32xf32>
    %392 = tpu.matmul %391, %3, %cst_239 {dimension_numbers = #tpu.dot_dimension_numbers<[1], [0], [0], [1], [0, 0, 1, 1], [], []>} : vector<2x32xf32>, vector<32x32xf32>, vector<2x32xf32> -> vector<2x32xf32>
    %393 = arith.addf %384, %392 : vector<2x32xf32>
    %394 = arith.negf %393 : vector<2x32xf32>
    %395 = math.exp %394 : vector<2x32xf32>
    %cst_240 = arith.constant 1.000000e+00 : f32
    %396 = vector.broadcast %cst_240 : f32 to vector<2x32xf32>
    %397 = arith.addf %396, %395 : vector<2x32xf32>
    %398 = arith.divf %396, %397 : vector<2x32xf32>
    %cst_241 = arith.constant dense<0.000000e+00> : vector<2x32xf32>
    %399 = tpu.matmul %391, %7, %cst_241 {dimension_numbers = #tpu.dot_dimension_numbers<[1], [0], [0], [1], [0, 0, 1, 1], [], []>} : vector<2x32xf32>, vector<32x32xf32>, vector<2x32xf32> -> vector<2x32xf32>
    %400 = arith.addf %387, %399 : vector<2x32xf32>
    %401 = arith.negf %400 : vector<2x32xf32>
    %402 = math.exp %401 : vector<2x32xf32>
    %cst_242 = arith.constant 1.000000e+00 : f32
    %403 = vector.broadcast %cst_242 : f32 to vector<2x32xf32>
    %404 = arith.addf %403, %402 : vector<2x32xf32>
    %405 = arith.divf %403, %404 : vector<2x32xf32>
    %cst_243 = arith.constant dense<0.000000e+00> : vector<2x32xf32>
    %406 = tpu.matmul %391, %11, %cst_243 {dimension_numbers = #tpu.dot_dimension_numbers<[1], [0], [0], [1], [0, 0, 1, 1], [], []>} : vector<2x32xf32>, vector<32x32xf32>, vector<2x32xf32> -> vector<2x32xf32>
    %407 = vector.broadcast %15 : vector<1x32xf32> to vector<2x32xf32>
    %408 = arith.addf %406, %407 : vector<2x32xf32>
    %409 = arith.mulf %398, %408 : vector<2x32xf32>
    %410 = arith.addf %390, %409 : vector<2x32xf32>
    %411 = math.tanh %410 : vector<2x32xf32>
    %cst_244 = arith.constant 1.000000e+00 : f32
    %412 = vector.broadcast %cst_244 : f32 to vector<2x32xf32>
    %413 = arith.subf %412, %405 : vector<2x32xf32>
    %414 = arith.mulf %413, %411 : vector<2x32xf32>
    %415 = arith.mulf %405, %391 : vector<2x32xf32>
    %416 = arith.addf %414, %415 : vector<2x32xf32>
    %c0_245 = arith.constant 0 : index
    %c0_246 = arith.constant 0 : index
    %417 = vector.load %arg9[%c0_245, %c0_246] : memref<2x32xf32, #tpu.memory_space<vmem>>, vector<2x32xf32>
    tpu.vector_store %arg9[%c0_245, %c0_246], %381 {strides = array<i32>} : memref<2x32xf32, #tpu.memory_space<vmem>>, vector<2x32xf32>,
    %c0_247 = arith.constant 0 : index
    %c0_248 = arith.constant 0 : index
    %418 = vector.load %arg10[%c0_247, %c0_248] : memref<2x32xf32, #tpu.memory_space<vmem>>, vector<2x32xf32>
    tpu.vector_store %arg10[%c0_247, %c0_248], %416 {strides = array<i32>} : memref<2x32xf32, #tpu.memory_space<vmem>>, vector<2x32xf32>,
    %c0_249 = arith.constant 0 : index
    %419 = arith.index_cast %c4_i32 : i32 to index
    %c0_250 = arith.constant 0 : index
    %c0_251 = arith.constant 0 : index
    %420 = vector.load %arg8[%c0_249, %419, %c0_250, %c0_251] : memref<2x8x2x32xf32, #tpu.memory_space<vmem>>, vector<1x1x2x32xf32>
    %421 = vector.shape_cast %420 : vector<1x1x2x32xf32> to vector<2x32xf32>
    %422 = vector.shape_cast %381 : vector<2x32xf32> to vector<1x1x2x32xf32>
    tpu.vector_store %arg8[%c0_249, %419, %c0_250, %c0_251], %422 {strides = array<i32>} : memref<2x8x2x32xf32, #tpu.memory_space<vmem>>, vector<1x1x2x32xf32>,
    %c1_252 = arith.constant 1 : index
    %423 = arith.index_cast %346 : i32 to index
    %c0_253 = arith.constant 0 : index
    %c0_254 = arith.constant 0 : index
    %424 = vector.load %arg8[%c1_252, %423, %c0_253, %c0_254] : memref<2x8x2x32xf32, #tpu.memory_space<vmem>>, vector<1x1x2x32xf32>
    %425 = vector.shape_cast %424 : vector<1x1x2x32xf32> to vector<2x32xf32>
    %426 = vector.shape_cast %416 : vector<2x32xf32> to vector<1x1x2x32xf32>
    tpu.vector_store %arg8[%c1_252, %423, %c0_253, %c0_254], %426 {strides = array<i32>} : memref<2x8x2x32xf32, #tpu.memory_space<vmem>>, vector<1x1x2x32xf32>,
    %c5_i32 = arith.constant 5 : i32
    %c7_i32_255 = arith.constant 7 : i32
    %427 = arith.subi %c7_i32_255, %c5_i32 : i32
    %c0_256 = arith.constant 0 : index
    %428 = arith.index_cast %c5_i32 : i32 to index
    %c0_257 = arith.constant 0 : index
    %c0_258 = arith.constant 0 : index
    %429 = vector.load %arg0[%c0_256, %428, %c0_257, %c0_258] : memref<2x8x2x32xf32, #tpu.memory_space<vmem>>, vector<1x1x2x32xf32>
    %430 = vector.shape_cast %429 : vector<1x1x2x32xf32> to vector<2x32xf32>
    %c0_259 = arith.constant 0 : index
    %431 = arith.index_cast %c5_i32 : i32 to index
    %c0_260 = arith.constant 0 : index
    %c0_261 = arith.constant 0 : index
    %432 = vector.load %arg1[%c0_259, %431, %c0_260, %c0_261] : memref<2x8x2x32xf32, #tpu.memory_space<vmem>>, vector<1x1x2x32xf32>
    %433 = vector.shape_cast %432 : vector<1x1x2x32xf32> to vector<2x32xf32>
    %c0_262 = arith.constant 0 : index
    %434 = arith.index_cast %c5_i32 : i32 to index
    %c0_263 = arith.constant 0 : index
    %c0_264 = arith.constant 0 : index
    %435 = vector.load %arg2[%c0_262, %434, %c0_263, %c0_264] : memref<2x8x2x32xf32, #tpu.memory_space<vmem>>, vector<1x1x2x32xf32>
    %436 = vector.shape_cast %435 : vector<1x1x2x32xf32> to vector<2x32xf32>
    %c0_265 = arith.constant 0 : index
    %c0_266 = arith.constant 0 : index
    %437 = vector.load %arg9[%c0_265, %c0_266] : memref<2x32xf32, #tpu.memory_space<vmem>>, vector<2x32xf32>
    %cst_267 = arith.constant dense<0.000000e+00> : vector<2x32xf32>
    %438 = tpu.matmul %437, %1, %cst_267 {dimension_numbers = #tpu.dot_dimension_numbers<[1], [0], [0], [1], [0, 0, 1, 1], [], []>} : vector<2x32xf32>, vector<32x32xf32>, vector<2x32xf32> -> vector<2x32xf32>
    %439 = arith.addf %430, %438 : vector<2x32xf32>
    %440 = arith.negf %439 : vector<2x32xf32>
    %441 = math.exp %440 : vector<2x32xf32>
    %cst_268 = arith.constant 1.000000e+00 : f32
    %442 = vector.broadcast %cst_268 : f32 to vector<2x32xf32>
    %443 = arith.addf %442, %441 : vector<2x32xf32>
    %444 = arith.divf %442, %443 : vector<2x32xf32>
    %cst_269 = arith.constant dense<0.000000e+00> : vector<2x32xf32>
    %445 = tpu.matmul %437, %5, %cst_269 {dimension_numbers = #tpu.dot_dimension_numbers<[1], [0], [0], [1], [0, 0, 1, 1], [], []>} : vector<2x32xf32>, vector<32x32xf32>, vector<2x32xf32> -> vector<2x32xf32>
    %446 = arith.addf %433, %445 : vector<2x32xf32>
    %447 = arith.negf %446 : vector<2x32xf32>
    %448 = math.exp %447 : vector<2x32xf32>
    %cst_270 = arith.constant 1.000000e+00 : f32
    %449 = vector.broadcast %cst_270 : f32 to vector<2x32xf32>
    %450 = arith.addf %449, %448 : vector<2x32xf32>
    %451 = arith.divf %449, %450 : vector<2x32xf32>
    %cst_271 = arith.constant dense<0.000000e+00> : vector<2x32xf32>
    %452 = tpu.matmul %437, %9, %cst_271 {dimension_numbers = #tpu.dot_dimension_numbers<[1], [0], [0], [1], [0, 0, 1, 1], [], []>} : vector<2x32xf32>, vector<32x32xf32>, vector<2x32xf32> -> vector<2x32xf32>
    %453 = vector.broadcast %13 : vector<1x32xf32> to vector<2x32xf32>
    %454 = arith.addf %452, %453 : vector<2x32xf32>
    %455 = arith.mulf %444, %454 : vector<2x32xf32>
    %456 = arith.addf %436, %455 : vector<2x32xf32>
    %457 = math.tanh %456 : vector<2x32xf32>
    %cst_272 = arith.constant 1.000000e+00 : f32
    %458 = vector.broadcast %cst_272 : f32 to vector<2x32xf32>
    %459 = arith.subf %458, %451 : vector<2x32xf32>
    %460 = arith.mulf %459, %457 : vector<2x32xf32>
    %461 = arith.mulf %451, %437 : vector<2x32xf32>
    %462 = arith.addf %460, %461 : vector<2x32xf32>
    %c1_273 = arith.constant 1 : index
    %463 = arith.index_cast %427 : i32 to index
    %c0_274 = arith.constant 0 : index
    %c0_275 = arith.constant 0 : index
    %464 = vector.load %arg0[%c1_273, %463, %c0_274, %c0_275] : memref<2x8x2x32xf32, #tpu.memory_space<vmem>>, vector<1x1x2x32xf32>
    %465 = vector.shape_cast %464 : vector<1x1x2x32xf32> to vector<2x32xf32>
    %c1_276 = arith.constant 1 : index
    %466 = arith.index_cast %427 : i32 to index
    %c0_277 = arith.constant 0 : index
    %c0_278 = arith.constant 0 : index
    %467 = vector.load %arg1[%c1_276, %466, %c0_277, %c0_278] : memref<2x8x2x32xf32, #tpu.memory_space<vmem>>, vector<1x1x2x32xf32>
    %468 = vector.shape_cast %467 : vector<1x1x2x32xf32> to vector<2x32xf32>
    %c1_279 = arith.constant 1 : index
    %469 = arith.index_cast %427 : i32 to index
    %c0_280 = arith.constant 0 : index
    %c0_281 = arith.constant 0 : index
    %470 = vector.load %arg2[%c1_279, %469, %c0_280, %c0_281] : memref<2x8x2x32xf32, #tpu.memory_space<vmem>>, vector<1x1x2x32xf32>
    %471 = vector.shape_cast %470 : vector<1x1x2x32xf32> to vector<2x32xf32>
    %c0_282 = arith.constant 0 : index
    %c0_283 = arith.constant 0 : index
    %472 = vector.load %arg10[%c0_282, %c0_283] : memref<2x32xf32, #tpu.memory_space<vmem>>, vector<2x32xf32>
    %cst_284 = arith.constant dense<0.000000e+00> : vector<2x32xf32>
    %473 = tpu.matmul %472, %3, %cst_284 {dimension_numbers = #tpu.dot_dimension_numbers<[1], [0], [0], [1], [0, 0, 1, 1], [], []>} : vector<2x32xf32>, vector<32x32xf32>, vector<2x32xf32> -> vector<2x32xf32>
    %474 = arith.addf %465, %473 : vector<2x32xf32>
    %475 = arith.negf %474 : vector<2x32xf32>
    %476 = math.exp %475 : vector<2x32xf32>
    %cst_285 = arith.constant 1.000000e+00 : f32
    %477 = vector.broadcast %cst_285 : f32 to vector<2x32xf32>
    %478 = arith.addf %477, %476 : vector<2x32xf32>
    %479 = arith.divf %477, %478 : vector<2x32xf32>
    %cst_286 = arith.constant dense<0.000000e+00> : vector<2x32xf32>
    %480 = tpu.matmul %472, %7, %cst_286 {dimension_numbers = #tpu.dot_dimension_numbers<[1], [0], [0], [1], [0, 0, 1, 1], [], []>} : vector<2x32xf32>, vector<32x32xf32>, vector<2x32xf32> -> vector<2x32xf32>
    %481 = arith.addf %468, %480 : vector<2x32xf32>
    %482 = arith.negf %481 : vector<2x32xf32>
    %483 = math.exp %482 : vector<2x32xf32>
    %cst_287 = arith.constant 1.000000e+00 : f32
    %484 = vector.broadcast %cst_287 : f32 to vector<2x32xf32>
    %485 = arith.addf %484, %483 : vector<2x32xf32>
    %486 = arith.divf %484, %485 : vector<2x32xf32>
    %cst_288 = arith.constant dense<0.000000e+00> : vector<2x32xf32>
    %487 = tpu.matmul %472, %11, %cst_288 {dimension_numbers = #tpu.dot_dimension_numbers<[1], [0], [0], [1], [0, 0, 1, 1], [], []>} : vector<2x32xf32>, vector<32x32xf32>, vector<2x32xf32> -> vector<2x32xf32>
    %488 = vector.broadcast %15 : vector<1x32xf32> to vector<2x32xf32>
    %489 = arith.addf %487, %488 : vector<2x32xf32>
    %490 = arith.mulf %479, %489 : vector<2x32xf32>
    %491 = arith.addf %471, %490 : vector<2x32xf32>
    %492 = math.tanh %491 : vector<2x32xf32>
    %cst_289 = arith.constant 1.000000e+00 : f32
    %493 = vector.broadcast %cst_289 : f32 to vector<2x32xf32>
    %494 = arith.subf %493, %486 : vector<2x32xf32>
    %495 = arith.mulf %494, %492 : vector<2x32xf32>
    %496 = arith.mulf %486, %472 : vector<2x32xf32>
    %497 = arith.addf %495, %496 : vector<2x32xf32>
    %c0_290 = arith.constant 0 : index
    %c0_291 = arith.constant 0 : index
    %498 = vector.load %arg9[%c0_290, %c0_291] : memref<2x32xf32, #tpu.memory_space<vmem>>, vector<2x32xf32>
    tpu.vector_store %arg9[%c0_290, %c0_291], %462 {strides = array<i32>} : memref<2x32xf32, #tpu.memory_space<vmem>>, vector<2x32xf32>,
    %c0_292 = arith.constant 0 : index
    %c0_293 = arith.constant 0 : index
    %499 = vector.load %arg10[%c0_292, %c0_293] : memref<2x32xf32, #tpu.memory_space<vmem>>, vector<2x32xf32>
    tpu.vector_store %arg10[%c0_292, %c0_293], %497 {strides = array<i32>} : memref<2x32xf32, #tpu.memory_space<vmem>>, vector<2x32xf32>,
    %c0_294 = arith.constant 0 : index
    %500 = arith.index_cast %c5_i32 : i32 to index
    %c0_295 = arith.constant 0 : index
    %c0_296 = arith.constant 0 : index
    %501 = vector.load %arg8[%c0_294, %500, %c0_295, %c0_296] : memref<2x8x2x32xf32, #tpu.memory_space<vmem>>, vector<1x1x2x32xf32>
    %502 = vector.shape_cast %501 : vector<1x1x2x32xf32> to vector<2x32xf32>
    %503 = vector.shape_cast %462 : vector<2x32xf32> to vector<1x1x2x32xf32>
    tpu.vector_store %arg8[%c0_294, %500, %c0_295, %c0_296], %503 {strides = array<i32>} : memref<2x8x2x32xf32, #tpu.memory_space<vmem>>, vector<1x1x2x32xf32>,
    %c1_297 = arith.constant 1 : index
    %504 = arith.index_cast %427 : i32 to index
    %c0_298 = arith.constant 0 : index
    %c0_299 = arith.constant 0 : index
    %505 = vector.load %arg8[%c1_297, %504, %c0_298, %c0_299] : memref<2x8x2x32xf32, #tpu.memory_space<vmem>>, vector<1x1x2x32xf32>
    %506 = vector.shape_cast %505 : vector<1x1x2x32xf32> to vector<2x32xf32>
    %507 = vector.shape_cast %497 : vector<2x32xf32> to vector<1x1x2x32xf32>
    tpu.vector_store %arg8[%c1_297, %504, %c0_298, %c0_299], %507 {strides = array<i32>} : memref<2x8x2x32xf32, #tpu.memory_space<vmem>>, vector<1x1x2x32xf32>,
    %c6_i32 = arith.constant 6 : i32
    %c7_i32_300 = arith.constant 7 : i32
    %508 = arith.subi %c7_i32_300, %c6_i32 : i32
    %c0_301 = arith.constant 0 : index
    %509 = arith.index_cast %c6_i32 : i32 to index
    %c0_302 = arith.constant 0 : index
    %c0_303 = arith.constant 0 : index
    %510 = vector.load %arg0[%c0_301, %509, %c0_302, %c0_303] : memref<2x8x2x32xf32, #tpu.memory_space<vmem>>, vector<1x1x2x32xf32>
    %511 = vector.shape_cast %510 : vector<1x1x2x32xf32> to vector<2x32xf32>
    %c0_304 = arith.constant 0 : index
    %512 = arith.index_cast %c6_i32 : i32 to index
    %c0_305 = arith.constant 0 : index
    %c0_306 = arith.constant 0 : index
    %513 = vector.load %arg1[%c0_304, %512, %c0_305, %c0_306] : memref<2x8x2x32xf32, #tpu.memory_space<vmem>>, vector<1x1x2x32xf32>
    %514 = vector.shape_cast %513 : vector<1x1x2x32xf32> to vector<2x32xf32>
    %c0_307 = arith.constant 0 : index
    %515 = arith.index_cast %c6_i32 : i32 to index
    %c0_308 = arith.constant 0 : index
    %c0_309 = arith.constant 0 : index
    %516 = vector.load %arg2[%c0_307, %515, %c0_308, %c0_309] : memref<2x8x2x32xf32, #tpu.memory_space<vmem>>, vector<1x1x2x32xf32>
    %517 = vector.shape_cast %516 : vector<1x1x2x32xf32> to vector<2x32xf32>
    %c0_310 = arith.constant 0 : index
    %c0_311 = arith.constant 0 : index
    %518 = vector.load %arg9[%c0_310, %c0_311] : memref<2x32xf32, #tpu.memory_space<vmem>>, vector<2x32xf32>
    %cst_312 = arith.constant dense<0.000000e+00> : vector<2x32xf32>
    %519 = tpu.matmul %518, %1, %cst_312 {dimension_numbers = #tpu.dot_dimension_numbers<[1], [0], [0], [1], [0, 0, 1, 1], [], []>} : vector<2x32xf32>, vector<32x32xf32>, vector<2x32xf32> -> vector<2x32xf32>
    %520 = arith.addf %511, %519 : vector<2x32xf32>
    %521 = arith.negf %520 : vector<2x32xf32>
    %522 = math.exp %521 : vector<2x32xf32>
    %cst_313 = arith.constant 1.000000e+00 : f32
    %523 = vector.broadcast %cst_313 : f32 to vector<2x32xf32>
    %524 = arith.addf %523, %522 : vector<2x32xf32>
    %525 = arith.divf %523, %524 : vector<2x32xf32>
    %cst_314 = arith.constant dense<0.000000e+00> : vector<2x32xf32>
    %526 = tpu.matmul %518, %5, %cst_314 {dimension_numbers = #tpu.dot_dimension_numbers<[1], [0], [0], [1], [0, 0, 1, 1], [], []>} : vector<2x32xf32>, vector<32x32xf32>, vector<2x32xf32> -> vector<2x32xf32>
    %527 = arith.addf %514, %526 : vector<2x32xf32>
    %528 = arith.negf %527 : vector<2x32xf32>
    %529 = math.exp %528 : vector<2x32xf32>
    %cst_315 = arith.constant 1.000000e+00 : f32
    %530 = vector.broadcast %cst_315 : f32 to vector<2x32xf32>
    %531 = arith.addf %530, %529 : vector<2x32xf32>
    %532 = arith.divf %530, %531 : vector<2x32xf32>
    %cst_316 = arith.constant dense<0.000000e+00> : vector<2x32xf32>
    %533 = tpu.matmul %518, %9, %cst_316 {dimension_numbers = #tpu.dot_dimension_numbers<[1], [0], [0], [1], [0, 0, 1, 1], [], []>} : vector<2x32xf32>, vector<32x32xf32>, vector<2x32xf32> -> vector<2x32xf32>
    %534 = vector.broadcast %13 : vector<1x32xf32> to vector<2x32xf32>
    %535 = arith.addf %533, %534 : vector<2x32xf32>
    %536 = arith.mulf %525, %535 : vector<2x32xf32>
    %537 = arith.addf %517, %536 : vector<2x32xf32>
    %538 = math.tanh %537 : vector<2x32xf32>
    %cst_317 = arith.constant 1.000000e+00 : f32
    %539 = vector.broadcast %cst_317 : f32 to vector<2x32xf32>
    %540 = arith.subf %539, %532 : vector<2x32xf32>
    %541 = arith.mulf %540, %538 : vector<2x32xf32>
    %542 = arith.mulf %532, %518 : vector<2x32xf32>
    %543 = arith.addf %541, %542 : vector<2x32xf32>
    %c1_318 = arith.constant 1 : index
    %544 = arith.index_cast %508 : i32 to index
    %c0_319 = arith.constant 0 : index
    %c0_320 = arith.constant 0 : index
    %545 = vector.load %arg0[%c1_318, %544, %c0_319, %c0_320] : memref<2x8x2x32xf32, #tpu.memory_space<vmem>>, vector<1x1x2x32xf32>
    %546 = vector.shape_cast %545 : vector<1x1x2x32xf32> to vector<2x32xf32>
    %c1_321 = arith.constant 1 : index
    %547 = arith.index_cast %508 : i32 to index
    %c0_322 = arith.constant 0 : index
    %c0_323 = arith.constant 0 : index
    %548 = vector.load %arg1[%c1_321, %547, %c0_322, %c0_323] : memref<2x8x2x32xf32, #tpu.memory_space<vmem>>, vector<1x1x2x32xf32>
    %549 = vector.shape_cast %548 : vector<1x1x2x32xf32> to vector<2x32xf32>
    %c1_324 = arith.constant 1 : index
    %550 = arith.index_cast %508 : i32 to index
    %c0_325 = arith.constant 0 : index
    %c0_326 = arith.constant 0 : index
    %551 = vector.load %arg2[%c1_324, %550, %c0_325, %c0_326] : memref<2x8x2x32xf32, #tpu.memory_space<vmem>>, vector<1x1x2x32xf32>
    %552 = vector.shape_cast %551 : vector<1x1x2x32xf32> to vector<2x32xf32>
    %c0_327 = arith.constant 0 : index
    %c0_328 = arith.constant 0 : index
    %553 = vector.load %arg10[%c0_327, %c0_328] : memref<2x32xf32, #tpu.memory_space<vmem>>, vector<2x32xf32>
    %cst_329 = arith.constant dense<0.000000e+00> : vector<2x32xf32>
    %554 = tpu.matmul %553, %3, %cst_329 {dimension_numbers = #tpu.dot_dimension_numbers<[1], [0], [0], [1], [0, 0, 1, 1], [], []>} : vector<2x32xf32>, vector<32x32xf32>, vector<2x32xf32> -> vector<2x32xf32>
    %555 = arith.addf %546, %554 : vector<2x32xf32>
    %556 = arith.negf %555 : vector<2x32xf32>
    %557 = math.exp %556 : vector<2x32xf32>
    %cst_330 = arith.constant 1.000000e+00 : f32
    %558 = vector.broadcast %cst_330 : f32 to vector<2x32xf32>
    %559 = arith.addf %558, %557 : vector<2x32xf32>
    %560 = arith.divf %558, %559 : vector<2x32xf32>
    %cst_331 = arith.constant dense<0.000000e+00> : vector<2x32xf32>
    %561 = tpu.matmul %553, %7, %cst_331 {dimension_numbers = #tpu.dot_dimension_numbers<[1], [0], [0], [1], [0, 0, 1, 1], [], []>} : vector<2x32xf32>, vector<32x32xf32>, vector<2x32xf32> -> vector<2x32xf32>
    %562 = arith.addf %549, %561 : vector<2x32xf32>
    %563 = arith.negf %562 : vector<2x32xf32>
    %564 = math.exp %563 : vector<2x32xf32>
    %cst_332 = arith.constant 1.000000e+00 : f32
    %565 = vector.broadcast %cst_332 : f32 to vector<2x32xf32>
    %566 = arith.addf %565, %564 : vector<2x32xf32>
    %567 = arith.divf %565, %566 : vector<2x32xf32>
    %cst_333 = arith.constant dense<0.000000e+00> : vector<2x32xf32>
    %568 = tpu.matmul %553, %11, %cst_333 {dimension_numbers = #tpu.dot_dimension_numbers<[1], [0], [0], [1], [0, 0, 1, 1], [], []>} : vector<2x32xf32>, vector<32x32xf32>, vector<2x32xf32> -> vector<2x32xf32>
    %569 = vector.broadcast %15 : vector<1x32xf32> to vector<2x32xf32>
    %570 = arith.addf %568, %569 : vector<2x32xf32>
    %571 = arith.mulf %560, %570 : vector<2x32xf32>
    %572 = arith.addf %552, %571 : vector<2x32xf32>
    %573 = math.tanh %572 : vector<2x32xf32>
    %cst_334 = arith.constant 1.000000e+00 : f32
    %574 = vector.broadcast %cst_334 : f32 to vector<2x32xf32>
    %575 = arith.subf %574, %567 : vector<2x32xf32>
    %576 = arith.mulf %575, %573 : vector<2x32xf32>
    %577 = arith.mulf %567, %553 : vector<2x32xf32>
    %578 = arith.addf %576, %577 : vector<2x32xf32>
    %c0_335 = arith.constant 0 : index
    %c0_336 = arith.constant 0 : index
    %579 = vector.load %arg9[%c0_335, %c0_336] : memref<2x32xf32, #tpu.memory_space<vmem>>, vector<2x32xf32>
    tpu.vector_store %arg9[%c0_335, %c0_336], %543 {strides = array<i32>} : memref<2x32xf32, #tpu.memory_space<vmem>>, vector<2x32xf32>,
    %c0_337 = arith.constant 0 : index
    %c0_338 = arith.constant 0 : index
    %580 = vector.load %arg10[%c0_337, %c0_338] : memref<2x32xf32, #tpu.memory_space<vmem>>, vector<2x32xf32>
    tpu.vector_store %arg10[%c0_337, %c0_338], %578 {strides = array<i32>} : memref<2x32xf32, #tpu.memory_space<vmem>>, vector<2x32xf32>,
    %c0_339 = arith.constant 0 : index
    %581 = arith.index_cast %c6_i32 : i32 to index
    %c0_340 = arith.constant 0 : index
    %c0_341 = arith.constant 0 : index
    %582 = vector.load %arg8[%c0_339, %581, %c0_340, %c0_341] : memref<2x8x2x32xf32, #tpu.memory_space<vmem>>, vector<1x1x2x32xf32>
    %583 = vector.shape_cast %582 : vector<1x1x2x32xf32> to vector<2x32xf32>
    %584 = vector.shape_cast %543 : vector<2x32xf32> to vector<1x1x2x32xf32>
    tpu.vector_store %arg8[%c0_339, %581, %c0_340, %c0_341], %584 {strides = array<i32>} : memref<2x8x2x32xf32, #tpu.memory_space<vmem>>, vector<1x1x2x32xf32>,
    %c1_342 = arith.constant 1 : index
    %585 = arith.index_cast %508 : i32 to index
    %c0_343 = arith.constant 0 : index
    %c0_344 = arith.constant 0 : index
    %586 = vector.load %arg8[%c1_342, %585, %c0_343, %c0_344] : memref<2x8x2x32xf32, #tpu.memory_space<vmem>>, vector<1x1x2x32xf32>
    %587 = vector.shape_cast %586 : vector<1x1x2x32xf32> to vector<2x32xf32>
    %588 = vector.shape_cast %578 : vector<2x32xf32> to vector<1x1x2x32xf32>
    tpu.vector_store %arg8[%c1_342, %585, %c0_343, %c0_344], %588 {strides = array<i32>} : memref<2x8x2x32xf32, #tpu.memory_space<vmem>>, vector<1x1x2x32xf32>,
    %c7_i32_345 = arith.constant 7 : i32
    %c7_i32_346 = arith.constant 7 : i32
    %589 = arith.subi %c7_i32_346, %c7_i32_345 : i32
    %c0_347 = arith.constant 0 : index
    %590 = arith.index_cast %c7_i32_345 : i32 to index
    %c0_348 = arith.constant 0 : index
    %c0_349 = arith.constant 0 : index
    %591 = vector.load %arg0[%c0_347, %590, %c0_348, %c0_349] : memref<2x8x2x32xf32, #tpu.memory_space<vmem>>, vector<1x1x2x32xf32>
    %592 = vector.shape_cast %591 : vector<1x1x2x32xf32> to vector<2x32xf32>
    %c0_350 = arith.constant 0 : index
    %593 = arith.index_cast %c7_i32_345 : i32 to index
    %c0_351 = arith.constant 0 : index
    %c0_352 = arith.constant 0 : index
    %594 = vector.load %arg1[%c0_350, %593, %c0_351, %c0_352] : memref<2x8x2x32xf32, #tpu.memory_space<vmem>>, vector<1x1x2x32xf32>
    %595 = vector.shape_cast %594 : vector<1x1x2x32xf32> to vector<2x32xf32>
    %c0_353 = arith.constant 0 : index
    %596 = arith.index_cast %c7_i32_345 : i32 to index
    %c0_354 = arith.constant 0 : index
    %c0_355 = arith.constant 0 : index
    %597 = vector.load %arg2[%c0_353, %596, %c0_354, %c0_355] : memref<2x8x2x32xf32, #tpu.memory_space<vmem>>, vector<1x1x2x32xf32>
    %598 = vector.shape_cast %597 : vector<1x1x2x32xf32> to vector<2x32xf32>
    %c0_356 = arith.constant 0 : index
    %c0_357 = arith.constant 0 : index
    %599 = vector.load %arg9[%c0_356, %c0_357] : memref<2x32xf32, #tpu.memory_space<vmem>>, vector<2x32xf32>
    %cst_358 = arith.constant dense<0.000000e+00> : vector<2x32xf32>
    %600 = tpu.matmul %599, %1, %cst_358 {dimension_numbers = #tpu.dot_dimension_numbers<[1], [0], [0], [1], [0, 0, 1, 1], [], []>} : vector<2x32xf32>, vector<32x32xf32>, vector<2x32xf32> -> vector<2x32xf32>
    %601 = arith.addf %592, %600 : vector<2x32xf32>
    %602 = arith.negf %601 : vector<2x32xf32>
    %603 = math.exp %602 : vector<2x32xf32>
    %cst_359 = arith.constant 1.000000e+00 : f32
    %604 = vector.broadcast %cst_359 : f32 to vector<2x32xf32>
    %605 = arith.addf %604, %603 : vector<2x32xf32>
    %606 = arith.divf %604, %605 : vector<2x32xf32>
    %cst_360 = arith.constant dense<0.000000e+00> : vector<2x32xf32>
    %607 = tpu.matmul %599, %5, %cst_360 {dimension_numbers = #tpu.dot_dimension_numbers<[1], [0], [0], [1], [0, 0, 1, 1], [], []>} : vector<2x32xf32>, vector<32x32xf32>, vector<2x32xf32> -> vector<2x32xf32>
    %608 = arith.addf %595, %607 : vector<2x32xf32>
    %609 = arith.negf %608 : vector<2x32xf32>
    %610 = math.exp %609 : vector<2x32xf32>
    %cst_361 = arith.constant 1.000000e+00 : f32
    %611 = vector.broadcast %cst_361 : f32 to vector<2x32xf32>
    %612 = arith.addf %611, %610 : vector<2x32xf32>
    %613 = arith.divf %611, %612 : vector<2x32xf32>
    %cst_362 = arith.constant dense<0.000000e+00> : vector<2x32xf32>
    %614 = tpu.matmul %599, %9, %cst_362 {dimension_numbers = #tpu.dot_dimension_numbers<[1], [0], [0], [1], [0, 0, 1, 1], [], []>} : vector<2x32xf32>, vector<32x32xf32>, vector<2x32xf32> -> vector<2x32xf32>
    %615 = vector.broadcast %13 : vector<1x32xf32> to vector<2x32xf32>
    %616 = arith.addf %614, %615 : vector<2x32xf32>
    %617 = arith.mulf %606, %616 : vector<2x32xf32>
    %618 = arith.addf %598, %617 : vector<2x32xf32>
    %619 = math.tanh %618 : vector<2x32xf32>
    %cst_363 = arith.constant 1.000000e+00 : f32
    %620 = vector.broadcast %cst_363 : f32 to vector<2x32xf32>
    %621 = arith.subf %620, %613 : vector<2x32xf32>
    %622 = arith.mulf %621, %619 : vector<2x32xf32>
    %623 = arith.mulf %613, %599 : vector<2x32xf32>
    %624 = arith.addf %622, %623 : vector<2x32xf32>
    %c1_364 = arith.constant 1 : index
    %625 = arith.index_cast %589 : i32 to index
    %c0_365 = arith.constant 0 : index
    %c0_366 = arith.constant 0 : index
    %626 = vector.load %arg0[%c1_364, %625, %c0_365, %c0_366] : memref<2x8x2x32xf32, #tpu.memory_space<vmem>>, vector<1x1x2x32xf32>
    %627 = vector.shape_cast %626 : vector<1x1x2x32xf32> to vector<2x32xf32>
    %c1_367 = arith.constant 1 : index
    %628 = arith.index_cast %589 : i32 to index
    %c0_368 = arith.constant 0 : index
    %c0_369 = arith.constant 0 : index
    %629 = vector.load %arg1[%c1_367, %628, %c0_368, %c0_369] : memref<2x8x2x32xf32, #tpu.memory_space<vmem>>, vector<1x1x2x32xf32>
    %630 = vector.shape_cast %629 : vector<1x1x2x32xf32> to vector<2x32xf32>
    %c1_370 = arith.constant 1 : index
    %631 = arith.index_cast %589 : i32 to index
    %c0_371 = arith.constant 0 : index
    %c0_372 = arith.constant 0 : index
    %632 = vector.load %arg2[%c1_370, %631, %c0_371, %c0_372] : memref<2x8x2x32xf32, #tpu.memory_space<vmem>>, vector<1x1x2x32xf32>
    %633 = vector.shape_cast %632 : vector<1x1x2x32xf32> to vector<2x32xf32>
    %c0_373 = arith.constant 0 : index
    %c0_374 = arith.constant 0 : index
    %634 = vector.load %arg10[%c0_373, %c0_374] : memref<2x32xf32, #tpu.memory_space<vmem>>, vector<2x32xf32>
    %cst_375 = arith.constant dense<0.000000e+00> : vector<2x32xf32>
    %635 = tpu.matmul %634, %3, %cst_375 {dimension_numbers = #tpu.dot_dimension_numbers<[1], [0], [0], [1], [0, 0, 1, 1], [], []>} : vector<2x32xf32>, vector<32x32xf32>, vector<2x32xf32> -> vector<2x32xf32>
    %636 = arith.addf %627, %635 : vector<2x32xf32>
    %637 = arith.negf %636 : vector<2x32xf32>
    %638 = math.exp %637 : vector<2x32xf32>
    %cst_376 = arith.constant 1.000000e+00 : f32
    %639 = vector.broadcast %cst_376 : f32 to vector<2x32xf32>
    %640 = arith.addf %639, %638 : vector<2x32xf32>
    %641 = arith.divf %639, %640 : vector<2x32xf32>
    %cst_377 = arith.constant dense<0.000000e+00> : vector<2x32xf32>
    %642 = tpu.matmul %634, %7, %cst_377 {dimension_numbers = #tpu.dot_dimension_numbers<[1], [0], [0], [1], [0, 0, 1, 1], [], []>} : vector<2x32xf32>, vector<32x32xf32>, vector<2x32xf32> -> vector<2x32xf32>
    %643 = arith.addf %630, %642 : vector<2x32xf32>
    %644 = arith.negf %643 : vector<2x32xf32>
    %645 = math.exp %644 : vector<2x32xf32>
    %cst_378 = arith.constant 1.000000e+00 : f32
    %646 = vector.broadcast %cst_378 : f32 to vector<2x32xf32>
    %647 = arith.addf %646, %645 : vector<2x32xf32>
    %648 = arith.divf %646, %647 : vector<2x32xf32>
    %cst_379 = arith.constant dense<0.000000e+00> : vector<2x32xf32>
    %649 = tpu.matmul %634, %11, %cst_379 {dimension_numbers = #tpu.dot_dimension_numbers<[1], [0], [0], [1], [0, 0, 1, 1], [], []>} : vector<2x32xf32>, vector<32x32xf32>, vector<2x32xf32> -> vector<2x32xf32>
    %650 = vector.broadcast %15 : vector<1x32xf32> to vector<2x32xf32>
    %651 = arith.addf %649, %650 : vector<2x32xf32>
    %652 = arith.mulf %641, %651 : vector<2x32xf32>
    %653 = arith.addf %633, %652 : vector<2x32xf32>
    %654 = math.tanh %653 : vector<2x32xf32>
    %cst_380 = arith.constant 1.000000e+00 : f32
    %655 = vector.broadcast %cst_380 : f32 to vector<2x32xf32>
    %656 = arith.subf %655, %648 : vector<2x32xf32>
    %657 = arith.mulf %656, %654 : vector<2x32xf32>
    %658 = arith.mulf %648, %634 : vector<2x32xf32>
    %659 = arith.addf %657, %658 : vector<2x32xf32>
    %c0_381 = arith.constant 0 : index
    %c0_382 = arith.constant 0 : index
    %660 = vector.load %arg9[%c0_381, %c0_382] : memref<2x32xf32, #tpu.memory_space<vmem>>, vector<2x32xf32>
    tpu.vector_store %arg9[%c0_381, %c0_382], %624 {strides = array<i32>} : memref<2x32xf32, #tpu.memory_space<vmem>>, vector<2x32xf32>,
    %c0_383 = arith.constant 0 : index
    %c0_384 = arith.constant 0 : index
    %661 = vector.load %arg10[%c0_383, %c0_384] : memref<2x32xf32, #tpu.memory_space<vmem>>, vector<2x32xf32>
    tpu.vector_store %arg10[%c0_383, %c0_384], %659 {strides = array<i32>} : memref<2x32xf32, #tpu.memory_space<vmem>>, vector<2x32xf32>,
    %c0_385 = arith.constant 0 : index
    %662 = arith.index_cast %c7_i32_345 : i32 to index
    %c0_386 = arith.constant 0 : index
    %c0_387 = arith.constant 0 : index
    %663 = vector.load %arg8[%c0_385, %662, %c0_386, %c0_387] : memref<2x8x2x32xf32, #tpu.memory_space<vmem>>, vector<1x1x2x32xf32>
    %664 = vector.shape_cast %663 : vector<1x1x2x32xf32> to vector<2x32xf32>
    %665 = vector.shape_cast %624 : vector<2x32xf32> to vector<1x1x2x32xf32>
    tpu.vector_store %arg8[%c0_385, %662, %c0_386, %c0_387], %665 {strides = array<i32>} : memref<2x8x2x32xf32, #tpu.memory_space<vmem>>, vector<1x1x2x32xf32>,
    %c1_388 = arith.constant 1 : index
    %666 = arith.index_cast %589 : i32 to index
    %c0_389 = arith.constant 0 : index
    %c0_390 = arith.constant 0 : index
    %667 = vector.load %arg8[%c1_388, %666, %c0_389, %c0_390] : memref<2x8x2x32xf32, #tpu.memory_space<vmem>>, vector<1x1x2x32xf32>
    %668 = vector.shape_cast %667 : vector<1x1x2x32xf32> to vector<2x32xf32>
    %669 = vector.shape_cast %659 : vector<2x32xf32> to vector<1x1x2x32xf32>
    tpu.vector_store %arg8[%c1_388, %666, %c0_389, %c0_390], %669 {strides = array<i32>} : memref<2x8x2x32xf32, #tpu.memory_space<vmem>>, vector<1x1x2x32xf32>,
    %c8_i32 = arith.constant 8 : i32
    return
  }
}

</mosaic_0001>

<bundles_post_ra>
// kernel: _lambda_.2
= control target key start
LH: loop header
LB: loop body
LE: loop exit
PB: predicated region body
PF: predicated region fallthrough
CT: control target
= control target key end

     0   :  { %v5359_v0 = vmov 0.0|0.0   ;;  %vm60_vm0 = vcmask 254976   ;;  %vm5360_vm1 = vmmov 0   ;;  %v5361_v8 = vmov 0.0   ;;  %s6203_s3 = inlined_call_operand.vmem [shape: f32[2,32,32], index: 3, kind: input, shape index: {}]   ;;  %s6204_s4 = inlined_call_operand.vmem [shape: f32[2,32,32], index: 4, kind: input, shape index: {}]   ;;  %s6205_s7 = inlined_call_operand.vmem [shape: f32[2,2,32], index: 7, kind: input, shape index: {}]   ;;  %s6206_s5 = inlined_call_operand.vmem [shape: f32[2,32,32], index: 5, kind: input, shape index: {}]   ;;  %s6207_s0 = inlined_call_operand.vmem [shape: f32[2,8,2,32], index: 0, kind: input, shape index: {}]   ;;  %s6208_s1 = inlined_call_operand.vmem [shape: f32[2,8,2,32], index: 1, kind: input, shape index: {}]   ;;  %s6209_s6 = inlined_call_operand.vmem [shape: f32[2,1,32], index: 6, kind: input, shape index: {}]   ;;  %s6210_s2 = inlined_call_operand.vmem [shape: f32[2,8,2,32], index: 2, kind: input, shape index: {}]   ;;  %s6211_s8 = inlined_call_operand.vmem [shape: f32[2,8,2,32], index: 8, kind: output, shape index: {}]  }
   0x1   :  { %4906 = vmatprep.subr.bf16.mxu0 %v5359_v0  ;;  %4912 = vmatprep.subr.bf16.mxu1 %v5359_v0  ;;  %v29_v1 = vld [vmem:[%s6203_s3] sm:$0xff]  ;;  %v30_v2 = vld [vmem:[%s6203_s3 + $0x8] sm:$0xff]  ;;  %v31_v6 = vld [vmem:[%s6203_s3 + $0x10] sm:$0xff]  ;;  %vm69_vm2 = vcmask 261120  }
   0x2   :  { %v38_v3 = vld [vmem:[%s6204_s4] sm:$0xff]  ;;  %v5418_v4 = vpack.c.bf16 %v30_v2, %v29_v1  ;;  %v39_v5 = vld [vmem:[%s6204_s4 + $0x8] sm:$0xff]  ;;  %v32_v7 = vld [vmem:[%s6203_s3 + $0x18] sm:$0xff]  ;;  %4386 = vmatprep.mubr.msk.f32.mxu0 %vm5360_vm1, %v5361_v8  ;;  %4397 = vmatprep.mubr.msk.f32.mxu1 %vm5360_vm1, %v5361_v8 }
   0x3   :  { %v5433_v9 = vpack.c.bf16 %v39_v5, %v38_v3  ;;  %v40_v10 = vld [vmem:[%s6204_s4 + $0x10] sm:$0xff]  ;;  %v41_v11 = vld [vmem:[%s6204_s4 + $0x18] sm:$0xff]  ;;  %v59_v12 = vld [vmem:[%s6205_s7] sm:$0x3]  ;;  %v5445_v13 = vpack.c.bf16 %v32_v7, %v31_v6 }
   0x4   :  { %4908 = vmatpush3.bf16.msra.mxu0 %v5418_v4  ;;  %61 = vst.msk [vmem:[#allocation2] sm:$0x3] %vm60_vm0, %v59_v12  ;;  %v5450_v14 = vpack.c.bf16 %v41_v11, %v40_v10  ;;  %v3982_v15 = vld [vmem:[%s6203_s3 + $0x20] sm:$0xff]  ;;  %v3983_v16 = vld [vmem:[%s6203_s3 + $0x28] sm:$0xff]  ;;  %v3984_v22 = vld [vmem:[%s6203_s3 + $0x30] sm:$0xff] }
   0x5   :  { %4914 = vmatpush3.bf16.msra.mxu1 %v5433_v9  ;;  %4909 = vmatprep.subr.bf16.mxu0 %v5359_v0  ;;  %v47_v17 = vld [vmem:[%s6206_s5] sm:$0xff]  ;;  %v48_v18 = vld [vmem:[%s6206_s5 + $0x8] sm:$0xff]  ;;  %v5471_v20 = vpack.c.bf16 %v3983_v16, %v3982_v15  ;;  %v3985_v23 = vld [vmem:[%s6203_s3 + $0x38] sm:$0xff] }
   0x6   :  { %4915 = vmatprep.subr.bf16.mxu1 %v5359_v0  ;;  %v3995_v19 = vld [vmem:[%s6205_s7 + $0x2] sm:$0x3]  ;;  %v5474_v21 = vpack.c.bf16 %v48_v18, %v47_v17  ;;  %v49_v24 = vld [vmem:[%s6206_s5 + $0x10] sm:$0xff]  ;;  %v50_v25 = vld [vmem:[%s6206_s5 + $0x18] sm:$0xff]  ;;  %v5497_v27 = vpack.c.bf16 %v3985_v23, %v3984_v22 }
   0x7   :  { %64 = vst.msk [vmem:[#allocation3] sm:$0x3] %vm60_vm0, %v3995_v19  ;;  %v5499_v28 = vpack.c.bf16 %v50_v25, %v49_v24  ;;  %v3986_v29 = vld [vmem:[%s6204_s4 + $0x20] sm:$0xff]  ;;  %v3987_v30 = vld [vmem:[%s6204_s4 + $0x28] sm:$0xff]  ;;  %v3988_v35 = vld [vmem:[%s6204_s4 + $0x30] sm:$0xff] }
   0x8   :  { %4911 = vmatpush3.bf16.msra.mxu0 %v5445_v13  ;;  %v3990_v31 = vld [vmem:[%s6206_s5 + $0x20] sm:$0xff]  ;;  %v3991_v32 = vld [vmem:[%s6206_s5 + $0x28] sm:$0xff]  ;;  %v5523_v34 = vpack.c.bf16 %v3987_v30, %v3986_v29  ;;  %v3989_v36 = vld [vmem:[%s6204_s4 + $0x38] sm:$0xff] }
   0x9   :  { %4917 = vmatpush3.bf16.msra.mxu1 %v5450_v14  ;;  %4918 = vmatprep.subr.bf16.mxu0 %v5359_v0  ;;  %v5533_v37 = vpack.c.bf16 %v3991_v32, %v3990_v31  ;;  %v3992_v38 = vld [vmem:[%s6206_s5 + $0x30] sm:$0xff]  ;;  %v3993_v39 = vld [vmem:[%s6206_s5 + $0x38] sm:$0xff]  ;;  %v5546_v40 = vpack.c.bf16 %v3989_v36, %v3988_v35  ;;  %v65_v42 = vld [vmem:[%s6207_s0] sm:$0x3] }
   0xa   :  { %4924 = vmatprep.subr.bf16.mxu1 %v5359_v0  ;;  %v5552_v41 = vpack.c.bf16 %v3993_v39, %v3992_v38  ;;  %v66_v46 = vld [vmem:[%s6208_s1] sm:$0x3]  ;;  %v4002_v51 = vld [vmem:[%s6207_s0 + $0x1e] sm:$0x3] }
   0xb   :  { %v5489_v26 = vld [vmem:[#allocation2] sm:$0x3]  ;;  %v4003_v59 = vld [vmem:[%s6208_s1 + $0x1e] sm:$0x3] }
   0xc   :  { %4387 = vmatmul.mubr.msk.f32.vlgmr.msra.gmra.mrb[0].mxu0 %vm69_vm2, %v5489_v26  ;;  %4398 = vmatmul.mubr.msk.f32.vlgmr.msra.gmra.mrb[0].mxu1 %vm69_vm2, %v5489_v26  ;;  %v5592_v11 = vld [vmem:[%s6209_s6] ss:$0 sm:$0xff]  ;;  %v5601_v19 = vld [vmem:[%s6209_s6 + $0x1] ss:$0 sm:$0xff]  ;;  %v4004_v30 = vld [vmem:[%s6210_s2 + $0x1e] sm:$0x3] }
   0xd   :  { %4926 = vmatpush3.bf16.msra.mxu1 %v5471_v20  ;;  %4920 = vmatpush3.bf16.msra.mxu0 %v5474_v21  ;;  %v67_v17 = vld [vmem:[%s6210_s2] sm:$0x3] }
   0xe   :  { %4927 = vmatprep.subr.bf16.mxu1 %v5359_v0  ;;  %4419 = vmatprep.mubr.msk.f32.mxu1 %vm5360_vm1, %v5361_v8  ;;  %v5520_v33 = vld [vmem:[#allocation3] sm:$0x3] }
   0xf   :  { %4921 = vmatprep.subr.bf16.mxu0 %v5359_v0  ;;  %4408 = vmatprep.mubr.msk.f32.mxu0 %vm5360_vm1, %v5361_v8 }
  0x11   :  { %4929 = vmatpush3.bf16.msra.mxu1 %v5497_v27  ;;  %4923 = vmatpush3.bf16.msra.mxu0 %v5499_v28 }
  0x12   :  { %4930 = vmatprep.subr.bf16.mxu0 %v5359_v0  ;;  %4936 = vmatprep.subr.bf16.mxu1 %v5359_v0 }
  0x14   :  { %4420 = vmatmul.mubr.msk.f32.vlgmr.msra.gmra.mrb[2].mxu1 %vm69_vm2, %v5520_v33  ;;  %4409 = vmatmul.mubr.msk.f32.vlgmr.msra.gmra.mrb[2].mxu0 %vm69_vm2, %v5489_v26 }
  0x15   :  { %4932 = vmatpush3.bf16.msra.mxu0 %v5523_v34  ;;  %4430 = vmatprep.mubr.msk.f32.mxu0 %vm5360_vm1, %v5361_v8 }
  0x16   :  { %4933 = vmatprep.subr.bf16.mxu0 %v5359_v0  ;;  %4938 = vmatpush3.bf16.msra.mxu1 %v5533_v37 }
  0x17   :  { %4939 = vmatprep.subr.bf16.mxu1 %v5359_v0  ;;  %4441 = vmatprep.mubr.msk.f32.mxu1 %vm5360_vm1, %v5361_v8 }
  0x19   :  { %4935 = vmatpush3.bf16.msra.mxu0 %v5546_v40 }
  0x1a   :  { %4941 = vmatpush3.bf16.msra.mxu1 %v5552_v41  ;;  %4942 = vmatprep.subr.bf16.mxu0 %v5359_v0 }
  0x1b   :  { %4948 = vmatprep.subr.bf16.mxu1 %v5359_v0 }
  0x1c   :  { %4431 = vmatmul.mubr.msk.f32.vlgmr.msra.gmra.mrb[4].mxu0 %vm69_vm2, %v5520_v33 }
  0x1d   :  { %4442 = vmatmul.mubr.msk.f32.vlgmr.msra.gmra.mrb[4].mxu1 %vm69_vm2, %v5520_v33  ;;  %4944 = vmatpush3.bf16.msra.mxu0 %v5418_v4 }
  0x1e   :  { %4950 = vmatpush3.bf16.msra.mxu1 %v5433_v9  ;;  %4945 = vmatprep.subr.bf16.mxu0 %v5359_v0 }
  0x1f   :  { %4951 = vmatprep.subr.bf16.mxu1 %v5359_v0  ;;  %4452 = vmatprep.mubr.msk.f32.mxu0 %vm5360_vm1, %v5361_v8 }
  0x20   :  { %4463 = vmatprep.mubr.msk.f32.mxu1 %vm5360_vm1, %v5361_v8 }
  0x21   :  { %4947 = vmatpush3.bf16.msra.mxu0 %v5445_v13 }
  0x22   :  { %4953 = vmatpush3.bf16.msra.mxu1 %v5450_v14  ;;  %4954 = vmatprep.subr.bf16.mxu0 %v5359_v0 }
  0x23   :  { %4960 = vmatprep.subr.bf16.mxu1 %v5359_v0 }
  0xdf   :  { %v139_v43 = vpop.f32.mrb[0].mxu0  ;;  %v216_v44 = vpop.f32.mrb[0].mxu1 }
  0xe0   :  { %v143_v45 = vadd.f32 %v139_v43, %v65_v42  ;;  %v4388_v47 = vpop.f32.mrb[1].mxu0  ;;  %v4399_v48 = vpop.f32.mrb[1].mxu1  ;;  %v220_v50 = vadd.f32 %v216_v44, %v66_v46 }
  0xe2   :  { %v3997_v49 = vmul.f32 -1.442695, %v143_v45  ;;  %v3999_v52 = vmul.f32 -1.442695, %v220_v50 }
  0xe4   :  { %5197 = vpow2.f32 %v3997_v49 }
  0xe5   :  { %5199 = vpow2.f32 %v3999_v52 }
  0xe7   :  { %v386_v53 = vpop.f32.mrb[2].mxu1  ;;  %v299_v54 = vpop.f32.mrb[2].mxu0 }
  0xe8   :  { %v390_v55 = vadd.f32 %v4002_v51, %v386_v53  ;;  %v4421_v56 = vpop.f32.mrb[3].mxu1  ;;  %v4410_v57 = vpop.f32.mrb[3].mxu0  ;;  %v300_v15 = vadd.f32 %v5592_v11, %v299_v54  ;;  %v4013_v54 = vld [vmem:[%s6208_s1 + $0x2] sm:$0x3] }
  0xea   :  { %v4006_v58 = vmul.f32 -1.442695, %v390_v55 }
  0xec   :  { %5201 = vpow2.f32 %v4006_v58 }
  0xee   :  { %v5198_v60 = vpop.eup %5197 }
  0xef   :  { %v147_v61 = vadd.f32 1.0, %v5198_v60  ;;  %v463_v62 = vpop.f32.mrb[4].mxu0  ;;  %v5200_v6 = vpop.eup %5199 }
  0xf0   :  { %v467_v63 = vadd.f32 %v4003_v59, %v463_v62  ;;  %v4432_v1 = vpop.f32.mrb[5].mxu0  ;;  %v546_v2 = vpop.f32.mrb[4].mxu1  ;;  %v224_v12 = vadd.f32 1.0, %v5200_v6  ;;  %v4020_v59 = vld [vmem:[%s6207_s0 + $0x1c] sm:$0x3] }
  0xf1   :  { %5203 = vrcp.f32 %v147_v61  ;;  %v4443_v3 = vpop.f32.mrb[5].mxu1  ;;  %v547_v25 = vadd.f32 %v5601_v19, %v546_v2 }
  0xf2   :  { %v4008_v5 = vmul.f32 -1.442695, %v467_v63 }
  0xf4   :  { %5205 = vpow2.f32 %v4008_v5  ;;  %v4021_v5 = vld [vmem:[%s6208_s1 + $0x1c] sm:$0x3] }
  0xf6   :  { %v5202_v7 = vpop.eup %5201 }
  0xf7   :  { %v394_v10 = vadd.f32 1.0, %v5202_v7 }
  0xf9   :  { %5207 = vrcp.f32 %v394_v10 }
  0xfa   :  { %5209 = vrcp.f32 %v224_v12 }
  0xfb   :  { %v5204_v16 = vpop.eup %5203 }
  0xfc   :  { %v303_v18 = vmul.f32 %v5204_v16, %v300_v15 }
  0xfe   :  { %v5206_v22 = vpop.eup %5205  ;;  %v304_v23 = vadd.f32 %v303_v18, %v67_v17 }
  0xff   :  { %v471_v24 = vadd.f32 1.0, %v5206_v22 }
 0x100   :  { %5211 = vtanh.f32 %v304_v23 }
 0x101   :  { %5213 = vrcp.f32 %v471_v24 }
 0x103   :  { %v5208_v29 = vpop.eup %5207 }
 0x104   :  { %v550_v31 = vmul.f32 %v5208_v29, %v547_v25  ;;  %v5210_v32 = vpop.eup %5209 }
 0x105   :  { %v306_v36 = vsub.f32 1.0, %v5210_v32  ;;  %v308_v39 = vmul.f32 %v5210_v32, %v5489_v26 }
 0x106   :  { %v551_v35 = vadd.f32 %v4004_v30, %v550_v31  ;;  %v4014_v31 = vld [vmem:[%s6210_s2 + $0x2] sm:$0x3] }
 0x108   :  { %5215 = vtanh.f32 %v551_v35 }
 0x10a   :  { %v5212_v38 = vpop.eup %5211 }
 0x10b   :  { %v307_v42 = vmul.f32 %v5212_v38, %v306_v36  ;;  %v5214_v43 = vpop.eup %5213 }
 0x10c   :  { %v553_v45 = vsub.f32 1.0, %v5214_v43  ;;  %v555_v47 = vmul.f32 %v5214_v43, %v5520_v33  ;;  %v4012_v33 = vld [vmem:[%s6207_s0 + $0x2] sm:$0x3]  ;;  %v4022_v43 = vld [vmem:[%s6210_s2 + $0x1c] sm:$0x3] }
 0x10d   :  { %v309_v44 = vadd.f32 %v308_v39, %v307_v42 }
 0x10f   :  { %557 = vst.msk [vmem:[#allocation2] sm:$0x3] %vm60_vm0, %v309_v44  ;;  %559 = vst.msk [vmem:[%s6211_s8] sm:$0x3] %vm60_vm0, %v309_v44 }
 0x112   :  { %v5216_v46 = vpop.eup %5215 }
 0x113   :  { %v554_v48 = vmul.f32 %v5216_v46, %v553_v45 }
 0x115   :  { %v556_v49 = vadd.f32 %v555_v47, %v554_v48 }
 0x116   :  { %v5614_v50 = vld [vmem:[#allocation2] sm:$0x3] }
 0x117   :  { %558 = vst.msk [vmem:[#allocation3] sm:$0x3] %vm60_vm0, %v556_v49  ;;  %4011 = vst.msk [vmem:[%s6211_s8 + $0x1e] sm:$0x3] %vm60_vm0, %v556_v49  ;;  %4453 = vmatmul.mubr.msk.f32.vlgmr.msra.gmra.mrb[6].mxu0 %vm69_vm2, %v5614_v50  ;;  %4464 = vmatmul.mubr.msk.f32.vlgmr.msra.gmra.mrb[6].mxu1 %vm69_vm2, %v5614_v50 }
 0x118   :  { %4956 = vmatpush3.bf16.msra.mxu0 %v5474_v21  ;;  %4962 = vmatpush3.bf16.msra.mxu1 %v5471_v20 }
 0x119   :  { %4957 = vmatprep.subr.bf16.mxu0 %v5359_v0  ;;  %4963 = vmatprep.subr.bf16.mxu1 %v5359_v0 }
 0x11a   :  { %4474 = vmatprep.mubr.msk.f32.mxu0 %vm5360_vm1, %v5361_v8  ;;  %4485 = vmatprep.mubr.msk.f32.mxu1 %vm5360_vm1, %v5361_v8 }
 0x11c   :  { %4959 = vmatpush3.bf16.msra.mxu0 %v5499_v28  ;;  %4965 = vmatpush3.bf16.msra.mxu1 %v5497_v27 }
 0x11d   :  { %4966 = vmatprep.subr.bf16.mxu0 %v5359_v0  ;;  %4972 = vmatprep.subr.bf16.mxu1 %v5359_v0 }
 0x11e   :  { %v5637_v26 = vld [vmem:[#allocation3] sm:$0x3] }
 0x11f   :  { %4475 = vmatmul.mubr.msk.f32.vlgmr.msra.gmra.mrb[8].mxu0 %vm69_vm2, %v5614_v50  ;;  %4486 = vmatmul.mubr.msk.f32.vlgmr.msra.gmra.mrb[8].mxu1 %vm69_vm2, %v5637_v26 }
 0x120   :  { %4968 = vmatpush3.bf16.msra.mxu0 %v5523_v34  ;;  %4974 = vmatpush3.bf16.msra.mxu1 %v5533_v37 }
 0x121   :  { %4969 = vmatprep.subr.bf16.mxu0 %v5359_v0  ;;  %4975 = vmatprep.subr.bf16.mxu1 %v5359_v0 }
 0x122   :  { %4496 = vmatprep.mubr.msk.f32.mxu0 %vm5360_vm1, %v5361_v8  ;;  %4507 = vmatprep.mubr.msk.f32.mxu1 %vm5360_vm1, %v5361_v8 }
 0x124   :  { %4971 = vmatpush3.bf16.msra.mxu0 %v5546_v40  ;;  %4977 = vmatpush3.bf16.msra.mxu1 %v5552_v41 }
 0x125   :  { %4978 = vmatprep.subr.bf16.mxu0 %v5359_v0  ;;  %4984 = vmatprep.subr.bf16.mxu1 %v5359_v0 }
 0x127   :  { %4497 = vmatmul.mubr.msk.f32.vlgmr.msra.gmra.mrb[10].mxu0 %vm69_vm2, %v5637_v26  ;;  %4508 = vmatmul.mubr.msk.f32.vlgmr.msra.gmra.mrb[10].mxu1 %vm69_vm2, %v5637_v26 }
 0x128   :  { %4980 = vmatpush3.bf16.msra.mxu0 %v5418_v4  ;;  %4986 = vmatpush3.bf16.msra.mxu1 %v5433_v9 }
 0x129   :  { %4981 = vmatprep.subr.bf16.mxu0 %v5359_v0  ;;  %4987 = vmatprep.subr.bf16.mxu1 %v5359_v0 }
 0x12a   :  { %4518 = vmatprep.mubr.msk.f32.mxu0 %vm5360_vm1, %v5361_v8  ;;  %4529 = vmatprep.mubr.msk.f32.mxu1 %vm5360_vm1, %v5361_v8 }
 0x12c   :  { %4983 = vmatpush3.bf16.msra.mxu0 %v5445_v13  ;;  %4989 = vmatpush3.bf16.msra.mxu1 %v5450_v14 }
 0x12d   :  { %4990 = vmatprep.subr.bf16.mxu0 %v5359_v0  ;;  %4996 = vmatprep.subr.bf16.mxu1 %v5359_v0 }
 0x1ea   :  { %v638_v51 = vpop.f32.mrb[6].mxu0  ;;  %v715_v52 = vpop.f32.mrb[6].mxu1 }
 0x1eb   :  { %v642_v53 = vadd.f32 %v4012_v33, %v638_v51  ;;  %v4454_v55 = vpop.f32.mrb[7].mxu0  ;;  %v4465_v56 = vpop.f32.mrb[7].mxu1  ;;  %v719_v58 = vadd.f32 %v4013_v54, %v715_v52 }
 0x1ed   :  { %v4016_v57 = vmul.f32 -1.442695, %v642_v53  ;;  %v4018_v60 = vmul.f32 -1.442695, %v719_v58 }
 0x1ef   :  { %5217 = vpow2.f32 %v4016_v57 }
 0x1f0   :  { %5219 = vpow2.f32 %v4018_v60 }
 0x1f2   :  { %v792_v61 = vpop.f32.mrb[8].mxu0  ;;  %v879_v62 = vpop.f32.mrb[8].mxu1 }
 0x1f3   :  { %v4476_v63 = vpop.f32.mrb[9].mxu0  ;;  %v883_v1 = vadd.f32 %v4020_v59, %v879_v62  ;;  %v4487_v2 = vpop.f32.mrb[9].mxu1  ;;  %v793_v29 = vadd.f32 %v5592_v11, %v792_v61  ;;  %v4031_v62 = vld [vmem:[%s6208_s1 + $0x4] sm:$0x3] }
 0x1f5   :  { %v4024_v3 = vmul.f32 -1.442695, %v883_v1 }
 0x1f7   :  { %5221 = vpow2.f32 %v4024_v3 }
 0x1f9   :  { %v5218_v6 = vpop.eup %5217 }
 0x1fa   :  { %v646_v7 = vadd.f32 1.0, %v5218_v6  ;;  %v956_v10 = vpop.f32.mrb[10].mxu0  ;;  %v1033_v12 = vpop.f32.mrb[10].mxu1 }
 0x1fb   :  { %v960_v15 = vadd.f32 %v4021_v5, %v956_v10  ;;  %v4498_v16 = vpop.f32.mrb[11].mxu0  ;;  %v4509_v17 = vpop.f32.mrb[11].mxu1  ;;  %v1034_v39 = vadd.f32 %v5601_v19, %v1033_v12  ;;  %v4038_v5 = vld [vmem:[%s6207_s0 + $0x1a] sm:$0x3] }
 0x1fc   :  { %5223 = vrcp.f32 %v646_v7  ;;  %v5220_v22 = vpop.eup %5219 }
 0x1fd   :  { %v4026_v18 = vmul.f32 -1.442695, %v960_v15  ;;  %v723_v25 = vadd.f32 1.0, %v5220_v22 }
 0x1ff   :  { %5225 = vpow2.f32 %v4026_v18  ;;  %v4039_v18 = vld [vmem:[%s6208_s1 + $0x1a] sm:$0x3] }
 0x201   :  { %v5222_v23 = vpop.eup %5221 }
 0x202   :  { %v887_v24 = vadd.f32 1.0, %v5222_v23 }
 0x204   :  { %5227 = vrcp.f32 %v887_v24 }
 0x205   :  { %5229 = vrcp.f32 %v723_v25 }
 0x206   :  { %v5224_v30 = vpop.eup %5223 }
 0x207   :  { %v796_v32 = vmul.f32 %v5224_v30, %v793_v29 }
 0x209   :  { %v5226_v35 = vpop.eup %5225  ;;  %v797_v36 = vadd.f32 %v4014_v31, %v796_v32 }
 0x20a   :  { %v964_v38 = vadd.f32 1.0, %v5226_v35 }
 0x20b   :  { %5231 = vtanh.f32 %v797_v36 }
 0x20c   :  { %5233 = vrcp.f32 %v964_v38 }
 0x20e   :  { %v5228_v42 = vpop.eup %5227 }
 0x20f   :  { %v1037_v44 = vmul.f32 %v5228_v42, %v1034_v39  ;;  %v5230_v45 = vpop.eup %5229 }
 0x210   :  { %v799_v47 = vsub.f32 1.0, %v5230_v45  ;;  %v801_v49 = vmul.f32 %v5230_v45, %v5614_v50 }
 0x211   :  { %v1038_v46 = vadd.f32 %v4022_v43, %v1037_v44  ;;  %v4032_v44 = vld [vmem:[%s6210_s2 + $0x4] sm:$0x3] }
 0x213   :  { %5235 = vtanh.f32 %v1038_v46 }
 0x215   :  { %v5232_v48 = vpop.eup %5231 }
 0x216   :  { %v800_v33 = vmul.f32 %v5232_v48, %v799_v47  ;;  %v5234_v52 = vpop.eup %5233 }
 0x217   :  { %v1040_v53 = vsub.f32 1.0, %v5234_v52  ;;  %v1042_v55 = vmul.f32 %v5234_v52, %v5637_v26  ;;  %v4030_v26 = vld [vmem:[%s6207_s0 + $0x4] sm:$0x3] }
 0x218   :  { %v802_v51 = vadd.f32 %v801_v49, %v800_v33 }
 0x21a   :  { %1044 = vst.msk [vmem:[#allocation2] sm:$0x3] %vm60_vm0, %v802_v51  ;;  %4028 = vst.msk [vmem:[%s6211_s8 + $0x2] sm:$0x3] %vm60_vm0, %v802_v51  ;;  %v4040_v51 = vld [vmem:[%s6210_s2 + $0x1a] sm:$0x3] }
 0x21d   :  { %v5236_v54 = vpop.eup %5235 }
 0x21e   :  { %v1041_v56 = vmul.f32 %v5236_v54, %v1040_v53 }
 0x220   :  { %v1043_v57 = vadd.f32 %v1042_v55, %v1041_v56 }
 0x221   :  { %v5698_v58 = vld [vmem:[#allocation2] sm:$0x3] }
 0x222   :  { %1045 = vst.msk [vmem:[#allocation3] sm:$0x3] %vm60_vm0, %v1043_v57  ;;  %4029 = vst.msk [vmem:[%s6211_s8 + $0x1c] sm:$0x3] %vm60_vm0, %v1043_v57  ;;  %4519 = vmatmul.mubr.msk.f32.vlgmr.msra.gmra.mrb[12].mxu0 %vm69_vm2, %v5698_v58  ;;  %4530 = vmatmul.mubr.msk.f32.vlgmr.msra.gmra.mrb[12].mxu1 %vm69_vm2, %v5698_v58 }
 0x223   :  { %4992 = vmatpush3.bf16.msra.mxu0 %v5474_v21  ;;  %4998 = vmatpush3.bf16.msra.mxu1 %v5471_v20 }
 0x224   :  { %4993 = vmatprep.subr.bf16.mxu0 %v5359_v0  ;;  %4999 = vmatprep.subr.bf16.mxu1 %v5359_v0 }
 0x225   :  { %4540 = vmatprep.mubr.msk.f32.mxu0 %vm5360_vm1, %v5361_v8  ;;  %4551 = vmatprep.mubr.msk.f32.mxu1 %vm5360_vm1, %v5361_v8 }
 0x227   :  { %4995 = vmatpush3.bf16.msra.mxu0 %v5499_v28  ;;  %5001 = vmatpush3.bf16.msra.mxu1 %v5497_v27 }
 0x228   :  { %5002 = vmatprep.subr.bf16.mxu0 %v5359_v0  ;;  %5008 = vmatprep.subr.bf16.mxu1 %v5359_v0 }
 0x229   :  { %v5721_v50 = vld [vmem:[#allocation3] sm:$0x3] }
 0x22a   :  { %4541 = vmatmul.mubr.msk.f32.vlgmr.msra.gmra.mrb[14].mxu0 %vm69_vm2, %v5698_v58  ;;  %4552 = vmatmul.mubr.msk.f32.vlgmr.msra.gmra.mrb[14].mxu1 %vm69_vm2, %v5721_v50 }
 0x22b   :  { %5004 = vmatpush3.bf16.msra.mxu0 %v5523_v34  ;;  %5010 = vmatpush3.bf16.msra.mxu1 %v5533_v37 }
 0x22c   :  { %5005 = vmatprep.subr.bf16.mxu0 %v5359_v0  ;;  %5011 = vmatprep.subr.bf16.mxu1 %v5359_v0 }
 0x22d   :  { %4562 = vmatprep.mubr.msk.f32.mxu0 %vm5360_vm1, %v5361_v8  ;;  %4573 = vmatprep.mubr.msk.f32.mxu1 %vm5360_vm1, %v5361_v8 }
 0x22f   :  { %5007 = vmatpush3.bf16.msra.mxu0 %v5546_v40  ;;  %5013 = vmatpush3.bf16.msra.mxu1 %v5552_v41 }
 0x230   :  { %5014 = vmatprep.subr.bf16.mxu0 %v5359_v0  ;;  %5020 = vmatprep.subr.bf16.mxu1 %v5359_v0 }
 0x232   :  { %4563 = vmatmul.mubr.msk.f32.vlgmr.msra.gmra.mrb[16].mxu0 %vm69_vm2, %v5721_v50  ;;  %4574 = vmatmul.mubr.msk.f32.vlgmr.msra.gmra.mrb[16].mxu1 %vm69_vm2, %v5721_v50 }
 0x233   :  { %5016 = vmatpush3.bf16.msra.mxu0 %v5418_v4  ;;  %5022 = vmatpush3.bf16.msra.mxu1 %v5433_v9 }
 0x234   :  { %5017 = vmatprep.subr.bf16.mxu0 %v5359_v0  ;;  %5023 = vmatprep.subr.bf16.mxu1 %v5359_v0 }
 0x235   :  { %4584 = vmatprep.mubr.msk.f32.mxu0 %vm5360_vm1, %v5361_v8  ;;  %4595 = vmatprep.mubr.msk.f32.mxu1 %vm5360_vm1, %v5361_v8 }
 0x237   :  { %5019 = vmatpush3.bf16.msra.mxu0 %v5445_v13  ;;  %5025 = vmatpush3.bf16.msra.mxu1 %v5450_v14 }
 0x238   :  { %5026 = vmatprep.subr.bf16.mxu0 %v5359_v0  ;;  %5032 = vmatprep.subr.bf16.mxu1 %v5359_v0 }
 0x2f5   :  { %v1126_v59 = vpop.f32.mrb[12].mxu0  ;;  %v1203_v60 = vpop.f32.mrb[12].mxu1 }
 0x2f6   :  { %v1130_v61 = vadd.f32 %v4030_v26, %v1126_v59  ;;  %v4520_v63 = vpop.f32.mrb[13].mxu0  ;;  %v4531_v1 = vpop.f32.mrb[13].mxu1  ;;  %v1207_v3 = vadd.f32 %v4031_v62, %v1203_v60 }
 0x2f8   :  { %v4034_v2 = vmul.f32 -1.442695, %v1130_v61  ;;  %v4036_v6 = vmul.f32 -1.442695, %v1207_v3 }
 0x2fa   :  { %5237 = vpow2.f32 %v4034_v2 }
 0x2fb   :  { %5239 = vpow2.f32 %v4036_v6 }
 0x2fd   :  { %v1280_v7 = vpop.f32.mrb[14].mxu0  ;;  %v1367_v10 = vpop.f32.mrb[14].mxu1 }
 0x2fe   :  { %v4542_v12 = vpop.f32.mrb[15].mxu0  ;;  %v1371_v15 = vadd.f32 %v4038_v5, %v1367_v10  ;;  %v4553_v16 = vpop.f32.mrb[15].mxu1  ;;  %v1281_v42 = vadd.f32 %v5592_v11, %v1280_v7  ;;  %v4049_v10 = vld [vmem:[%s6208_s1 + $0x6] sm:$0x3] }
 0x300   :  { %v4042_v17 = vmul.f32 -1.442695, %v1371_v15 }
 0x302   :  { %5241 = vpow2.f32 %v4042_v17 }
 0x304   :  { %v5238_v22 = vpop.eup %5237 }
 0x305   :  { %v1134_v23 = vadd.f32 1.0, %v5238_v22  ;;  %v1444_v24 = vpop.f32.mrb[16].mxu0  ;;  %v1521_v25 = vpop.f32.mrb[16].mxu1 }
 0x306   :  { %v1448_v29 = vadd.f32 %v4039_v18, %v1444_v24  ;;  %v4564_v30 = vpop.f32.mrb[17].mxu0  ;;  %v4575_v31 = vpop.f32.mrb[17].mxu1  ;;  %v1522_v49 = vadd.f32 %v5601_v19, %v1521_v25  ;;  %v4056_v18 = vld [vmem:[%s6207_s0 + $0x18] sm:$0x3] }
 0x307   :  { %5243 = vrcp.f32 %v1134_v23  ;;  %v5240_v35 = vpop.eup %5239 }
 0x308   :  { %v4044_v32 = vmul.f32 -1.442695, %v1448_v29  ;;  %v1211_v39 = vadd.f32 1.0, %v5240_v35 }
 0x30a   :  { %5245 = vpow2.f32 %v4044_v32  ;;  %v4057_v32 = vld [vmem:[%s6208_s1 + $0x18] sm:$0x3] }
 0x30c   :  { %v5242_v36 = vpop.eup %5241 }
 0x30d   :  { %v1375_v38 = vadd.f32 1.0, %v5242_v36 }
 0x30f   :  { %5247 = vrcp.f32 %v1375_v38 }
 0x310   :  { %5249 = vrcp.f32 %v1211_v39 }
 0x311   :  { %v5244_v43 = vpop.eup %5243 }
 0x312   :  { %v1284_v45 = vmul.f32 %v5244_v43, %v1281_v42 }
 0x314   :  { %v5246_v46 = vpop.eup %5245  ;;  %v1285_v47 = vadd.f32 %v4032_v44, %v1284_v45 }
 0x315   :  { %v1452_v48 = vadd.f32 1.0, %v5246_v46 }
 0x316   :  { %5251 = vtanh.f32 %v1285_v47 }
 0x317   :  { %5253 = vrcp.f32 %v1452_v48 }
 0x319   :  { %v5248_v33 = vpop.eup %5247 }
 0x31a   :  { %v1525_v52 = vmul.f32 %v5248_v33, %v1522_v49  ;;  %v5250_v53 = vpop.eup %5249 }
 0x31b   :  { %v1287_v55 = vsub.f32 1.0, %v5250_v53  ;;  %v1289_v57 = vmul.f32 %v5250_v53, %v5698_v58 }
 0x31c   :  { %v1526_v54 = vadd.f32 %v4040_v51, %v1525_v52  ;;  %v4050_v52 = vld [vmem:[%s6210_s2 + $0x6] sm:$0x3] }
 0x31e   :  { %5255 = vtanh.f32 %v1526_v54 }
 0x320   :  { %v5252_v56 = vpop.eup %5251 }
 0x321   :  { %v1288_v26 = vmul.f32 %v5252_v56, %v1287_v55  ;;  %v5254_v60 = vpop.eup %5253 }
 0x322   :  { %v1528_v61 = vsub.f32 1.0, %v5254_v60  ;;  %v1530_v63 = vmul.f32 %v5254_v60, %v5721_v50  ;;  %v4048_v50 = vld [vmem:[%s6207_s0 + $0x6] sm:$0x3] }
 0x323   :  { %v1290_v59 = vadd.f32 %v1289_v57, %v1288_v26 }
 0x325   :  { %1532 = vst.msk [vmem:[#allocation2] sm:$0x3] %vm60_vm0, %v1290_v59  ;;  %4046 = vst.msk [vmem:[%s6211_s8 + $0x4] sm:$0x3] %vm60_vm0, %v1290_v59  ;;  %v4058_v59 = vld [vmem:[%s6210_s2 + $0x18] sm:$0x3] }
 0x328   :  { %v5256_v62 = vpop.eup %5255 }
 0x329   :  { %v1529_v1 = vmul.f32 %v5256_v62, %v1528_v61 }
 0x32b   :  { %v1531_v2 = vadd.f32 %v1530_v63, %v1529_v1 }
 0x32c   :  { %v5782_v3 = vld [vmem:[#allocation2] sm:$0x3] }
 0x32d   :  { %1533 = vst.msk [vmem:[#allocation3] sm:$0x3] %vm60_vm0, %v1531_v2  ;;  %4047 = vst.msk [vmem:[%s6211_s8 + $0x1a] sm:$0x3] %vm60_vm0, %v1531_v2  ;;  %4585 = vmatmul.mubr.msk.f32.vlgmr.msra.gmra.mrb[18].mxu0 %vm69_vm2, %v5782_v3  ;;  %4596 = vmatmul.mubr.msk.f32.vlgmr.msra.gmra.mrb[18].mxu1 %vm69_vm2, %v5782_v3 }
 0x32e   :  { %5028 = vmatpush3.bf16.msra.mxu0 %v5474_v21  ;;  %5034 = vmatpush3.bf16.msra.mxu1 %v5471_v20 }
 0x32f   :  { %5029 = vmatprep.subr.bf16.mxu0 %v5359_v0  ;;  %5035 = vmatprep.subr.bf16.mxu1 %v5359_v0 }
 0x330   :  { %4606 = vmatprep.mubr.msk.f32.mxu0 %vm5360_vm1, %v5361_v8  ;;  %4617 = vmatprep.mubr.msk.f32.mxu1 %vm5360_vm1, %v5361_v8 }
 0x332   :  { %5031 = vmatpush3.bf16.msra.mxu0 %v5499_v28  ;;  %5037 = vmatpush3.bf16.msra.mxu1 %v5497_v27 }
 0x333   :  { %5038 = vmatprep.subr.bf16.mxu0 %v5359_v0  ;;  %5044 = vmatprep.subr.bf16.mxu1 %v5359_v0 }
 0x334   :  { %v5805_v58 = vld [vmem:[#allocation3] sm:$0x3] }
 0x335   :  { %4607 = vmatmul.mubr.msk.f32.vlgmr.msra.gmra.mrb[20].mxu0 %vm69_vm2, %v5782_v3  ;;  %4618 = vmatmul.mubr.msk.f32.vlgmr.msra.gmra.mrb[20].mxu1 %vm69_vm2, %v5805_v58 }
 0x336   :  { %5040 = vmatpush3.bf16.msra.mxu0 %v5523_v34  ;;  %5046 = vmatpush3.bf16.msra.mxu1 %v5533_v37 }
 0x337   :  { %5041 = vmatprep.subr.bf16.mxu0 %v5359_v0  ;;  %5047 = vmatprep.subr.bf16.mxu1 %v5359_v0 }
 0x338   :  { %4628 = vmatprep.mubr.msk.f32.mxu0 %vm5360_vm1, %v5361_v8  ;;  %4639 = vmatprep.mubr.msk.f32.mxu1 %vm5360_vm1, %v5361_v8 }
 0x33a   :  { %5043 = vmatpush3.bf16.msra.mxu0 %v5546_v40  ;;  %5049 = vmatpush3.bf16.msra.mxu1 %v5552_v41 }
 0x33b   :  { %5050 = vmatprep.subr.bf16.mxu0 %v5359_v0  ;;  %5056 = vmatprep.subr.bf16.mxu1 %v5359_v0 }
 0x33d   :  { %4629 = vmatmul.mubr.msk.f32.vlgmr.msra.gmra.mrb[22].mxu0 %vm69_vm2, %v5805_v58  ;;  %4640 = vmatmul.mubr.msk.f32.vlgmr.msra.gmra.mrb[22].mxu1 %vm69_vm2, %v5805_v58 }
 0x33e   :  { %5052 = vmatpush3.bf16.msra.mxu0 %v5418_v4  ;;  %5058 = vmatpush3.bf16.msra.mxu1 %v5433_v9 }
 0x33f   :  { %5053 = vmatprep.subr.bf16.mxu0 %v5359_v0  ;;  %5059 = vmatprep.subr.bf16.mxu1 %v5359_v0 }
 0x340   :  { %4650 = vmatprep.mubr.msk.f32.mxu0 %vm5360_vm1, %v5361_v8  ;;  %4661 = vmatprep.mubr.msk.f32.mxu1 %vm5360_vm1, %v5361_v8 }
 0x342   :  { %5055 = vmatpush3.bf16.msra.mxu0 %v5445_v13  ;;  %5061 = vmatpush3.bf16.msra.mxu1 %v5450_v14 }
 0x343   :  { %5062 = vmatprep.subr.bf16.mxu0 %v5359_v0  ;;  %5068 = vmatprep.subr.bf16.mxu1 %v5359_v0 }
 0x400   :  { %v1614_v5 = vpop.f32.mrb[18].mxu0  ;;  %v1691_v6 = vpop.f32.mrb[18].mxu1 }
 0x401   :  { %v1618_v7 = vadd.f32 %v4048_v50, %v1614_v5  ;;  %v4586_v12 = vpop.f32.mrb[19].mxu0  ;;  %v4597_v15 = vpop.f32.mrb[19].mxu1  ;;  %v1695_v17 = vadd.f32 %v4049_v10, %v1691_v6 }
 0x403   :  { %v4052_v16 = vmul.f32 -1.442695, %v1618_v7  ;;  %v4054_v22 = vmul.f32 -1.442695, %v1695_v17 }
 0x405   :  { %5257 = vpow2.f32 %v4052_v16 }
 0x406   :  { %5259 = vpow2.f32 %v4054_v22 }
 0x408   :  { %v1768_v23 = vpop.f32.mrb[20].mxu0  ;;  %v1855_v24 = vpop.f32.mrb[20].mxu1 }
 0x409   :  { %v4608_v25 = vpop.f32.mrb[21].mxu0  ;;  %v1859_v29 = vadd.f32 %v4056_v18, %v1855_v24  ;;  %v4619_v30 = vpop.f32.mrb[21].mxu1  ;;  %v1769_v33 = vadd.f32 %v5592_v11, %v1768_v23  ;;  %v4067_v24 = vld [vmem:[%s6208_s1 + $0x8] sm:$0x3] }
 0x40b   :  { %v4060_v31 = vmul.f32 -1.442695, %v1859_v29 }
 0x40d   :  { %5261 = vpow2.f32 %v4060_v31 }
 0x40f   :  { %v5258_v35 = vpop.eup %5257 }
 0x410   :  { %v1622_v36 = vadd.f32 1.0, %v5258_v35  ;;  %v1932_v38 = vpop.f32.mrb[22].mxu0  ;;  %v2009_v39 = vpop.f32.mrb[22].mxu1 }
 0x411   :  { %v1936_v42 = vadd.f32 %v4057_v32, %v1932_v38  ;;  %v4630_v43 = vpop.f32.mrb[23].mxu0  ;;  %v4641_v44 = vpop.f32.mrb[23].mxu1  ;;  %v2010_v57 = vadd.f32 %v5601_v19, %v2009_v39  ;;  %v4074_v32 = vld [vmem:[%s6207_s0 + $0x16] sm:$0x3] }
 0x412   :  { %5263 = vrcp.f32 %v1622_v36  ;;  %v5260_v46 = vpop.eup %5259 }
 0x413   :  { %v4062_v45 = vmul.f32 -1.442695, %v1936_v42  ;;  %v1699_v49 = vadd.f32 1.0, %v5260_v46 }
 0x415   :  { %5265 = vpow2.f32 %v4062_v45  ;;  %v4075_v45 = vld [vmem:[%s6208_s1 + $0x16] sm:$0x3] }
 0x417   :  { %v5262_v47 = vpop.eup %5261 }
 0x418   :  { %v1863_v48 = vadd.f32 1.0, %v5262_v47 }
 0x41a   :  { %5267 = vrcp.f32 %v1863_v48 }
 0x41b   :  { %5269 = vrcp.f32 %v1699_v49 }
 0x41c   :  { %v5264_v51 = vpop.eup %5263 }
 0x41d   :  { %v1772_v53 = vmul.f32 %v5264_v51, %v1769_v33 }
 0x41f   :  { %v5266_v54 = vpop.eup %5265  ;;  %v1773_v55 = vadd.f32 %v4050_v52, %v1772_v53 }
 0x420   :  { %v1940_v56 = vadd.f32 1.0, %v5266_v54 }
 0x421   :  { %5271 = vtanh.f32 %v1773_v55 }
 0x422   :  { %5273 = vrcp.f32 %v1940_v56 }
 0x424   :  { %v5268_v26 = vpop.eup %5267 }
 0x425   :  { %v2013_v60 = vmul.f32 %v5268_v26, %v2010_v57  ;;  %v5270_v61 = vpop.eup %5269 }
 0x426   :  { %v1775_v63 = vsub.f32 1.0, %v5270_v61  ;;  %v1777_v2 = vmul.f32 %v5270_v61, %v5782_v3 }
 0x427   :  { %v2014_v62 = vadd.f32 %v4058_v59, %v2013_v60  ;;  %v4068_v60 = vld [vmem:[%s6210_s2 + $0x8] sm:$0x3] }
 0x429   :  { %5275 = vtanh.f32 %v2014_v62 }
 0x42b   :  { %v5272_v1 = vpop.eup %5271 }
 0x42c   :  { %v1776_v50 = vmul.f32 %v5272_v1, %v1775_v63  ;;  %v5274_v6 = vpop.eup %5273 }
 0x42d   :  { %v2016_v7 = vsub.f32 1.0, %v5274_v6  ;;  %v2018_v12 = vmul.f32 %v5274_v6, %v5805_v58  ;;  %v4066_v58 = vld [vmem:[%s6207_s0 + $0x8] sm:$0x3] }
 0x42e   :  { %v1778_v5 = vadd.f32 %v1777_v2, %v1776_v50 }
 0x430   :  { %2020 = vst.msk [vmem:[#allocation2] sm:$0x3] %vm60_vm0, %v1778_v5  ;;  %4064 = vst.msk [vmem:[%s6211_s8 + $0x6] sm:$0x3] %vm60_vm0, %v1778_v5  ;;  %v4076_v5 = vld [vmem:[%s6210_s2 + $0x16] sm:$0x3] }
 0x433   :  { %v5276_v10 = vpop.eup %5275 }
 0x434   :  { %v2017_v15 = vmul.f32 %v5276_v10, %v2016_v7 }
 0x436   :  { %v2019_v16 = vadd.f32 %v2018_v12, %v2017_v15 }
 0x437   :  { %v5866_v17 = vld [vmem:[#allocation2] sm:$0x3] }
 0x438   :  { %2021 = vst.msk [vmem:[#allocation3] sm:$0x3] %vm60_vm0, %v2019_v16  ;;  %4065 = vst.msk [vmem:[%s6211_s8 + $0x18] sm:$0x3] %vm60_vm0, %v2019_v16  ;;  %4651 = vmatmul.mubr.msk.f32.vlgmr.msra.gmra.mrb[24].mxu0 %vm69_vm2, %v5866_v17  ;;  %4662 = vmatmul.mubr.msk.f32.vlgmr.msra.gmra.mrb[24].mxu1 %vm69_vm2, %v5866_v17 }
 0x439   :  { %5064 = vmatpush3.bf16.msra.mxu0 %v5474_v21  ;;  %5070 = vmatpush3.bf16.msra.mxu1 %v5471_v20 }
 0x43a   :  { %5065 = vmatprep.subr.bf16.mxu0 %v5359_v0  ;;  %5071 = vmatprep.subr.bf16.mxu1 %v5359_v0 }
 0x43b   :  { %4672 = vmatprep.mubr.msk.f32.mxu0 %vm5360_vm1, %v5361_v8  ;;  %4683 = vmatprep.mubr.msk.f32.mxu1 %vm5360_vm1, %v5361_v8 }
 0x43d   :  { %5067 = vmatpush3.bf16.msra.mxu0 %v5499_v28  ;;  %5073 = vmatpush3.bf16.msra.mxu1 %v5497_v27 }
 0x43e   :  { %5074 = vmatprep.subr.bf16.mxu0 %v5359_v0  ;;  %5080 = vmatprep.subr.bf16.mxu1 %v5359_v0 }
 0x43f   :  { %v5889_v3 = vld [vmem:[#allocation3] sm:$0x3] }
 0x440   :  { %4673 = vmatmul.mubr.msk.f32.vlgmr.msra.gmra.mrb[26].mxu0 %vm69_vm2, %v5866_v17  ;;  %4684 = vmatmul.mubr.msk.f32.vlgmr.msra.gmra.mrb[26].mxu1 %vm69_vm2, %v5889_v3 }
 0x441   :  { %5076 = vmatpush3.bf16.msra.mxu0 %v5523_v34  ;;  %5082 = vmatpush3.bf16.msra.mxu1 %v5533_v37 }
 0x442   :  { %5077 = vmatprep.subr.bf16.mxu0 %v5359_v0  ;;  %5083 = vmatprep.subr.bf16.mxu1 %v5359_v0 }
 0x443   :  { %4694 = vmatprep.mubr.msk.f32.mxu0 %vm5360_vm1, %v5361_v8  ;;  %4705 = vmatprep.mubr.msk.f32.mxu1 %vm5360_vm1, %v5361_v8 }
 0x445   :  { %5079 = vmatpush3.bf16.msra.mxu0 %v5546_v40  ;;  %5085 = vmatpush3.bf16.msra.mxu1 %v5552_v41 }
 0x446   :  { %5086 = vmatprep.subr.bf16.mxu0 %v5359_v0  ;;  %5092 = vmatprep.subr.bf16.mxu1 %v5359_v0 }
 0x448   :  { %4695 = vmatmul.mubr.msk.f32.vlgmr.msra.gmra.mrb[28].mxu0 %vm69_vm2, %v5889_v3  ;;  %4706 = vmatmul.mubr.msk.f32.vlgmr.msra.gmra.mrb[28].mxu1 %vm69_vm2, %v5889_v3 }
 0x449   :  { %5088 = vmatpush3.bf16.msra.mxu0 %v5418_v4  ;;  %5094 = vmatpush3.bf16.msra.mxu1 %v5433_v9 }
 0x44a   :  { %5089 = vmatprep.subr.bf16.mxu0 %v5359_v0  ;;  %5095 = vmatprep.subr.bf16.mxu1 %v5359_v0 }
 0x44b   :  { %4716 = vmatprep.mubr.msk.f32.mxu0 %vm5360_vm1, %v5361_v8  ;;  %4727 = vmatprep.mubr.msk.f32.mxu1 %vm5360_vm1, %v5361_v8 }
 0x44d   :  { %5091 = vmatpush3.bf16.msra.mxu0 %v5445_v13  ;;  %5097 = vmatpush3.bf16.msra.mxu1 %v5450_v14 }
 0x44e   :  { %5098 = vmatprep.subr.bf16.mxu0 %v5359_v0  ;;  %5104 = vmatprep.subr.bf16.mxu1 %v5359_v0 }
 0x50b   :  { %v2102_v18 = vpop.f32.mrb[24].mxu0  ;;  %v2179_v22 = vpop.f32.mrb[24].mxu1 }
 0x50c   :  { %v2106_v23 = vadd.f32 %v4066_v58, %v2102_v18  ;;  %v4652_v25 = vpop.f32.mrb[25].mxu0  ;;  %v4663_v29 = vpop.f32.mrb[25].mxu1  ;;  %v2183_v31 = vadd.f32 %v4067_v24, %v2179_v22 }
 0x50e   :  { %v4070_v30 = vmul.f32 -1.442695, %v2106_v23  ;;  %v4072_v35 = vmul.f32 -1.442695, %v2183_v31 }
 0x510   :  { %5277 = vpow2.f32 %v4070_v30 }
 0x511   :  { %5279 = vpow2.f32 %v4072_v35  ;;  %v4085_v35 = vld [vmem:[%s6208_s1 + $0xa] sm:$0x3] }
 0x513   :  { %v2256_v36 = vpop.f32.mrb[26].mxu0  ;;  %v2343_v38 = vpop.f32.mrb[26].mxu1 }
 0x514   :  { %v4674_v39 = vpop.f32.mrb[27].mxu0  ;;  %v2347_v42 = vadd.f32 %v4074_v32, %v2343_v38  ;;  %v4685_v43 = vpop.f32.mrb[27].mxu1  ;;  %v2257_v26 = vadd.f32 %v5592_v11, %v2256_v36 }
 0x515   :  { %v4092_v43 = vld [vmem:[%s6207_s0 + $0x14] sm:$0x3] }
 0x516   :  { %v4078_v44 = vmul.f32 -1.442695, %v2347_v42 }
 0x518   :  { %5281 = vpow2.f32 %v4078_v44 }
 0x51a   :  { %v5278_v46 = vpop.eup %5277 }
 0x51b   :  { %v2110_v47 = vadd.f32 1.0, %v5278_v46  ;;  %v2420_v48 = vpop.f32.mrb[28].mxu0  ;;  %v2497_v49 = vpop.f32.mrb[28].mxu1 }
 0x51c   :  { %v2424_v33 = vadd.f32 %v4075_v45, %v2420_v48  ;;  %v4696_v51 = vpop.f32.mrb[29].mxu0  ;;  %v4707_v52 = vpop.f32.mrb[29].mxu1  ;;  %v2498_v2 = vadd.f32 %v5601_v19, %v2497_v49 }
 0x51d   :  { %5283 = vrcp.f32 %v2110_v47  ;;  %v5280_v54 = vpop.eup %5279  ;;  %v4093_v51 = vld [vmem:[%s6208_s1 + $0x14] sm:$0x3] }
 0x51e   :  { %v4080_v53 = vmul.f32 -1.442695, %v2424_v33  ;;  %v2187_v57 = vadd.f32 1.0, %v5280_v54 }
 0x520   :  { %5285 = vpow2.f32 %v4080_v53 }
 0x522   :  { %v5282_v55 = vpop.eup %5281 }
 0x523   :  { %v2351_v56 = vadd.f32 1.0, %v5282_v55 }
 0x525   :  { %5287 = vrcp.f32 %v2351_v56 }
 0x526   :  { %5289 = vrcp.f32 %v2187_v57 }
 0x527   :  { %v5284_v59 = vpop.eup %5283 }
 0x528   :  { %v2260_v61 = vmul.f32 %v5284_v59, %v2257_v26 }
 0x52a   :  { %v5286_v62 = vpop.eup %5285  ;;  %v2261_v63 = vadd.f32 %v4068_v60, %v2260_v61 }
 0x52b   :  { %v2428_v1 = vadd.f32 1.0, %v5286_v62 }
 0x52c   :  { %5291 = vtanh.f32 %v2261_v63 }
 0x52d   :  { %5293 = vrcp.f32 %v2428_v1  ;;  %v6022_v1 = vld [vmem:[%s6209_s6] ss:$0 sm:$0xff] }
 0x52f   :  { %v5288_v50 = vpop.eup %5287 }
 0x530   :  { %v2501_v11 = vmul.f32 %v5288_v50, %v2498_v2  ;;  %v5290_v6 = vpop.eup %5289 }
 0x531   :  { %v2263_v10 = vsub.f32 1.0, %v5290_v6  ;;  %v2265_v15 = vmul.f32 %v5290_v6, %v5866_v17 }
 0x532   :  { %v2502_v7 = vadd.f32 %v4076_v5, %v2501_v11  ;;  %v4086_v5 = vld [vmem:[%s6210_s2 + $0xa] sm:$0x3] }
 0x534   :  { %5295 = vtanh.f32 %v2502_v7 }
 0x536   :  { %v5292_v12 = vpop.eup %5291 }
 0x537   :  { %v2264_v16 = vmul.f32 %v5292_v12, %v2263_v10  ;;  %v5294_v18 = vpop.eup %5293  ;;  %v6031_v12 = vld [vmem:[%s6209_s6 + $0x1] ss:$0 sm:$0xff] }
 0x538   :  { %v2504_v19 = vsub.f32 1.0, %v5294_v18  ;;  %v2506_v23 = vmul.f32 %v5294_v18, %v5889_v3  ;;  %v4084_v3 = vld [vmem:[%s6207_s0 + $0xa] sm:$0x3] }
 0x539   :  { %v2266_v58 = vadd.f32 %v2265_v15, %v2264_v16 }
 0x53b   :  { %4082 = vst.msk [vmem:[%s6211_s8 + $0x8] sm:$0x3] %vm60_vm0, %v2266_v58  ;;  %2508 = vst.msk [vmem:[#allocation2] sm:$0x3] %vm60_vm0, %v2266_v58  ;;  %v4094_v58 = vld [vmem:[%s6210_s2 + $0x14] sm:$0x3] }
 0x53e   :  { %v5296_v22 = vpop.eup %5295 }
 0x53f   :  { %v2505_v24 = vmul.f32 %v5296_v22, %v2504_v19 }
 0x541   :  { %v2507_v25 = vadd.f32 %v2506_v23, %v2505_v24 }
 0x542   :  { %v5950_v29 = vld [vmem:[#allocation2] sm:$0x3] }
 0x543   :  { %4083 = vst.msk [vmem:[%s6211_s8 + $0x16] sm:$0x3] %vm60_vm0, %v2507_v25  ;;  %2509 = vst.msk [vmem:[#allocation3] sm:$0x3] %vm60_vm0, %v2507_v25  ;;  %4717 = vmatmul.mubr.msk.f32.vlgmr.msra.gmra.mrb[30].mxu0 %vm69_vm2, %v5950_v29  ;;  %4728 = vmatmul.mubr.msk.f32.vlgmr.msra.gmra.mrb[30].mxu1 %vm69_vm2, %v5950_v29 }
 0x544   :  { %5100 = vmatpush3.bf16.msra.mxu0 %v5474_v21  ;;  %5106 = vmatpush3.bf16.msra.mxu1 %v5471_v20 }
 0x545   :  { %5101 = vmatprep.subr.bf16.mxu0 %v5359_v0  ;;  %5107 = vmatprep.subr.bf16.mxu1 %v5359_v0 }
 0x546   :  { %4738 = vmatprep.mubr.msk.f32.mxu0 %vm5360_vm1, %v5361_v8  ;;  %4749 = vmatprep.mubr.msk.f32.mxu1 %vm5360_vm1, %v5361_v8 }
 0x548   :  { %5103 = vmatpush3.bf16.msra.mxu0 %v5499_v28  ;;  %5109 = vmatpush3.bf16.msra.mxu1 %v5497_v27 }
 0x549   :  { %5110 = vmatprep.subr.bf16.mxu0 %v5359_v0  ;;  %5116 = vmatprep.subr.bf16.mxu1 %v5359_v0 }
 0x54a   :  { %v5973_v17 = vld [vmem:[#allocation3] sm:$0x3] }
 0x54b   :  { %4739 = vmatmul.mubr.msk.f32.vlgmr.msra.gmra.mrb[32].mxu0 %vm69_vm2, %v5950_v29  ;;  %4750 = vmatmul.mubr.msk.f32.vlgmr.msra.gmra.mrb[32].mxu1 %vm69_vm2, %v5973_v17 }
 0x54c   :  { %5112 = vmatpush3.bf16.msra.mxu0 %v5523_v34  ;;  %5118 = vmatpush3.bf16.msra.mxu1 %v5533_v37 }
 0x54d   :  { %5113 = vmatprep.subr.bf16.mxu0 %v5359_v0  ;;  %5119 = vmatprep.subr.bf16.mxu1 %v5359_v0 }
 0x54e   :  { %4760 = vmatprep.mubr.msk.f32.mxu0 %vm5360_vm1, %v5361_v8  ;;  %4771 = vmatprep.mubr.msk.f32.mxu1 %vm5360_vm1, %v5361_v8 }
 0x550   :  { %5115 = vmatpush3.bf16.msra.mxu0 %v5546_v40  ;;  %5121 = vmatpush3.bf16.msra.mxu1 %v5552_v41 }
 0x551   :  { %5122 = vmatprep.subr.bf16.mxu0 %v5359_v0  ;;  %5128 = vmatprep.subr.bf16.mxu1 %v5359_v0 }
 0x553   :  { %4761 = vmatmul.mubr.msk.f32.vlgmr.msra.gmra.mrb[34].mxu0 %vm69_vm2, %v5973_v17  ;;  %4772 = vmatmul.mubr.msk.f32.vlgmr.msra.gmra.mrb[34].mxu1 %vm69_vm2, %v5973_v17 }
 0x554   :  { %5124 = vmatpush3.bf16.msra.mxu0 %v5418_v4  ;;  %5130 = vmatpush3.bf16.msra.mxu1 %v5433_v9 }
 0x555   :  { %5125 = vmatprep.subr.bf16.mxu0 %v5359_v0  ;;  %5131 = vmatprep.subr.bf16.mxu1 %v5359_v0 }
 0x556   :  { %4782 = vmatprep.mubr.msk.f32.mxu0 %vm5360_vm1, %v5361_v8  ;;  %4793 = vmatprep.mubr.msk.f32.mxu1 %vm5360_vm1, %v5361_v8 }
 0x558   :  { %5127 = vmatpush3.bf16.msra.mxu0 %v5445_v13  ;;  %5133 = vmatpush3.bf16.msra.mxu1 %v5450_v14 }
 0x559   :  { %5134 = vmatprep.subr.bf16.mxu0 %v5359_v0  ;;  %5140 = vmatprep.subr.bf16.mxu1 %v5359_v0 }
 0x616   :  { %v2590_v30 = vpop.f32.mrb[30].mxu0  ;;  %v2667_v31 = vpop.f32.mrb[30].mxu1 }
 0x617   :  { %v2594_v32 = vadd.f32 %v4084_v3, %v2590_v30  ;;  %v4718_v36 = vpop.f32.mrb[31].mxu0  ;;  %v4729_v38 = vpop.f32.mrb[31].mxu1  ;;  %v2671_v42 = vadd.f32 %v4085_v35, %v2667_v31 }
 0x619   :  { %v4088_v39 = vmul.f32 -1.442695, %v2594_v32  ;;  %v4090_v44 = vmul.f32 -1.442695, %v2671_v42 }
 0x61b   :  { %5297 = vpow2.f32 %v4088_v39 }
 0x61c   :  { %5299 = vpow2.f32 %v4090_v44  ;;  %v4103_v44 = vld [vmem:[%s6208_s1 + $0xc] sm:$0x3] }
 0x61e   :  { %v2744_v45 = vpop.f32.mrb[32].mxu0  ;;  %v2831_v46 = vpop.f32.mrb[32].mxu1 }
 0x61f   :  { %v4740_v47 = vpop.f32.mrb[33].mxu0  ;;  %v2835_v48 = vadd.f32 %v4092_v43, %v2831_v46  ;;  %v4751_v49 = vpop.f32.mrb[33].mxu1  ;;  %v2745_v2 = vadd.f32 %v6022_v1, %v2744_v45 }
 0x621   :  { %v4096_v33 = vmul.f32 -1.442695, %v2835_v48 }
 0x623   :  { %5301 = vpow2.f32 %v4096_v33 }
 0x625   :  { %v5298_v52 = vpop.eup %5297 }
 0x626   :  { %v2598_v53 = vadd.f32 1.0, %v5298_v52  ;;  %v2908_v54 = vpop.f32.mrb[34].mxu0  ;;  %v2985_v55 = vpop.f32.mrb[34].mxu1 }
 0x627   :  { %v2912_v56 = vadd.f32 %v4093_v51, %v2908_v54  ;;  %v4762_v57 = vpop.f32.mrb[35].mxu0  ;;  %v4773_v26 = vpop.f32.mrb[35].mxu1  ;;  %v2986_v15 = vadd.f32 %v6031_v12, %v2985_v55  ;;  %v4111_v55 = vld [vmem:[%s6208_s1 + $0x12] sm:$0x3] }
 0x628   :  { %5303 = vrcp.f32 %v2598_v53  ;;  %v5300_v60 = vpop.eup %5299 }
 0x629   :  { %v4098_v59 = vmul.f32 -1.442695, %v2912_v56  ;;  %v2675_v63 = vadd.f32 1.0, %v5300_v60 }
 0x62b   :  { %5305 = vpow2.f32 %v4098_v59 }
 0x62d   :  { %v5302_v61 = vpop.eup %5301 }
 0x62e   :  { %v2839_v62 = vadd.f32 1.0, %v5302_v61 }
 0x630   :  { %5307 = vrcp.f32 %v2839_v62 }
 0x631   :  { %5309 = vrcp.f32 %v2675_v63 }
 0x632   :  { %v5304_v50 = vpop.eup %5303 }
 0x633   :  { %v2748_v11 = vmul.f32 %v5304_v50, %v2745_v2 }
 0x635   :  { %v5306_v6 = vpop.eup %5305  ;;  %v2749_v7 = vadd.f32 %v4086_v5, %v2748_v11 }
 0x636   :  { %v2916_v10 = vadd.f32 1.0, %v5306_v6 }
 0x637   :  { %5311 = vtanh.f32 %v2749_v7 }
 0x638   :  { %5313 = vrcp.f32 %v2916_v10  ;;  %v4104_v10 = vld [vmem:[%s6210_s2 + $0xc] sm:$0x3] }
 0x63a   :  { %v5308_v16 = vpop.eup %5307 }
 0x63b   :  { %v2989_v18 = vmul.f32 %v5308_v16, %v2986_v15  ;;  %v5310_v19 = vpop.eup %5309 }
 0x63c   :  { %v2751_v23 = vsub.f32 1.0, %v5310_v19  ;;  %v2753_v25 = vmul.f32 %v5310_v19, %v5950_v29 }
 0x63d   :  { %v2990_v22 = vadd.f32 %v4094_v58, %v2989_v18 }
 0x63f   :  { %5315 = vtanh.f32 %v2990_v22 }
 0x641   :  { %v5312_v24 = vpop.eup %5311 }
 0x642   :  { %v2752_v3 = vmul.f32 %v5312_v24, %v2751_v23  ;;  %v5314_v31 = vpop.eup %5313  ;;  %v4112_v23 = vld [vmem:[%s6210_s2 + $0x12] sm:$0x3] }
 0x643   :  { %v2992_v32 = vsub.f32 1.0, %v5314_v31  ;;  %v2994_v36 = vmul.f32 %v5314_v31, %v5973_v17 }
 0x644   :  { %v2754_v30 = vadd.f32 %v2753_v25, %v2752_v3 }
 0x646   :  { %4100 = vst.msk [vmem:[%s6211_s8 + $0xa] sm:$0x3] %vm60_vm0, %v2754_v30  ;;  %2996 = vst.msk [vmem:[#allocation2] sm:$0x3] %vm60_vm0, %v2754_v30 }
 0x649   :  { %v5316_v35 = vpop.eup %5315 }
 0x64a   :  { %v2993_v38 = vmul.f32 %v5316_v35, %v2992_v32 }
 0x64c   :  { %v2995_v39 = vadd.f32 %v2994_v36, %v2993_v38 }
 0x64d   :  { %v6044_v42 = vld [vmem:[#allocation2] sm:$0x3] }
 0x64e   :  { %4101 = vst.msk [vmem:[%s6211_s8 + $0x14] sm:$0x3] %vm60_vm0, %v2995_v39  ;;  %2997 = vst.msk [vmem:[#allocation3] sm:$0x3] %vm60_vm0, %v2995_v39  ;;  %4783 = vmatmul.mubr.msk.f32.vlgmr.msra.gmra.mrb[36].mxu0 %vm69_vm2, %v6044_v42  ;;  %4794 = vmatmul.mubr.msk.f32.vlgmr.msra.gmra.mrb[36].mxu1 %vm69_vm2, %v6044_v42 }
 0x64f   :  { %5136 = vmatpush3.bf16.msra.mxu0 %v5474_v21  ;;  %5142 = vmatpush3.bf16.msra.mxu1 %v5471_v20 }
 0x650   :  { %5137 = vmatprep.subr.bf16.mxu0 %v5359_v0  ;;  %5143 = vmatprep.subr.bf16.mxu1 %v5359_v0 }
 0x651   :  { %4804 = vmatprep.mubr.msk.f32.mxu0 %vm5360_vm1, %v5361_v8  ;;  %4815 = vmatprep.mubr.msk.f32.mxu1 %vm5360_vm1, %v5361_v8 }
 0x653   :  { %5139 = vmatpush3.bf16.msra.mxu0 %v5499_v28  ;;  %5145 = vmatpush3.bf16.msra.mxu1 %v5497_v27 }
 0x654   :  { %5146 = vmatprep.subr.bf16.mxu0 %v5359_v0  ;;  %5152 = vmatprep.subr.bf16.mxu1 %v5359_v0 }
 0x655   :  { %v6067_v29 = vld [vmem:[#allocation3] sm:$0x3] }
 0x656   :  { %4805 = vmatmul.mubr.msk.f32.vlgmr.msra.gmra.mrb[38].mxu0 %vm69_vm2, %v6044_v42  ;;  %4816 = vmatmul.mubr.msk.f32.vlgmr.msra.gmra.mrb[38].mxu1 %vm69_vm2, %v6067_v29 }
 0x657   :  { %5148 = vmatpush3.bf16.msra.mxu0 %v5523_v34  ;;  %5154 = vmatpush3.bf16.msra.mxu1 %v5533_v37 }
 0x658   :  { %5149 = vmatprep.subr.bf16.mxu0 %v5359_v0  ;;  %5155 = vmatprep.subr.bf16.mxu1 %v5359_v0 }
 0x659   :  { %4826 = vmatprep.mubr.msk.f32.mxu0 %vm5360_vm1, %v5361_v8  ;;  %4837 = vmatprep.mubr.msk.f32.mxu1 %vm5360_vm1, %v5361_v8 }
 0x65b   :  { %5151 = vmatpush3.bf16.msra.mxu0 %v5546_v40  ;;  %5157 = vmatpush3.bf16.msra.mxu1 %v5552_v41 }
 0x65c   :  { %5158 = vmatprep.subr.bf16.mxu0 %v5359_v0  ;;  %5164 = vmatprep.subr.bf16.mxu1 %v5359_v0 }
 0x65e   :  { %4827 = vmatmul.mubr.msk.f32.vlgmr.msra.gmra.mrb[40].mxu0 %vm69_vm2, %v6067_v29  ;;  %4838 = vmatmul.mubr.msk.f32.vlgmr.msra.gmra.mrb[40].mxu1 %vm69_vm2, %v6067_v29 }
 0x65f   :  { %5160 = vmatpush3.bf16.msra.mxu0 %v5418_v4  ;;  %5166 = vmatpush3.bf16.msra.mxu1 %v5433_v9  ;;  %v4102_v4 = vld [vmem:[%s6207_s0 + $0xc] sm:$0x3] }
 0x660   :  { %5161 = vmatprep.subr.bf16.mxu0 %v5359_v0  ;;  %5167 = vmatprep.subr.bf16.mxu1 %v5359_v0 }
 0x661   :  { %4848 = vmatprep.mubr.msk.f32.mxu0 %vm5360_vm1, %v5361_v8  ;;  %4859 = vmatprep.mubr.msk.f32.mxu1 %vm5360_vm1, %v5361_v8 }
 0x663   :  { %5163 = vmatpush3.bf16.msra.mxu0 %v5445_v13  ;;  %5169 = vmatpush3.bf16.msra.mxu1 %v5450_v14  ;;  %v4110_v14 = vld [vmem:[%s6207_s0 + $0x12] sm:$0x3] }
 0x664   :  { %5170 = vmatprep.subr.bf16.mxu0 %v5359_v0  ;;  %5176 = vmatprep.subr.bf16.mxu1 %v5359_v0 }
 0x721   :  { %v3078_v9 = vpop.f32.mrb[36].mxu0  ;;  %v3155_v17 = vpop.f32.mrb[36].mxu1 }
 0x722   :  { %v3082_v43 = vadd.f32 %v4102_v4, %v3078_v9  ;;  %v4784_v45 = vpop.f32.mrb[37].mxu0  ;;  %v4795_v46 = vpop.f32.mrb[37].mxu1  ;;  %v3159_v47 = vadd.f32 %v4103_v44, %v3155_v17 }
 0x724   :  { %v4106_v13 = vmul.f32 -1.442695, %v3082_v43  ;;  %v4108_v48 = vmul.f32 -1.442695, %v3159_v47 }
 0x726   :  { %5317 = vpow2.f32 %v4106_v13 }
 0x727   :  { %5319 = vpow2.f32 %v4108_v48 }
 0x729   :  { %v3232_v49 = vpop.f32.mrb[38].mxu0  ;;  %v3319_v33 = vpop.f32.mrb[38].mxu1 }
 0x72a   :  { %v4806_v51 = vpop.f32.mrb[39].mxu0  ;;  %v3323_v52 = vadd.f32 %v4110_v14, %v3319_v33  ;;  %v4817_v53 = vpop.f32.mrb[39].mxu1  ;;  %v3233_v6 = vadd.f32 %v6022_v1, %v3232_v49  ;;  %v4129_v49 = vld [vmem:[%s6208_s1 + $0x10] sm:$0x3] }
 0x72c   :  { %v4114_v54 = vmul.f32 -1.442695, %v3323_v52 }
 0x72e   :  { %5321 = vpow2.f32 %v4114_v54 }
 0x730   :  { %v5318_v56 = vpop.eup %5317 }
 0x731   :  { %v3086_v57 = vadd.f32 1.0, %v5318_v56  ;;  %v3396_v26 = vpop.f32.mrb[40].mxu0  ;;  %v3473_v59 = vpop.f32.mrb[40].mxu1 }
 0x732   :  { %v3400_v60 = vadd.f32 %v4111_v55, %v3396_v26  ;;  %v4828_v61 = vpop.f32.mrb[41].mxu0  ;;  %v4839_v62 = vpop.f32.mrb[41].mxu1  ;;  %v3474_v19 = vadd.f32 %v6031_v12, %v3473_v59 }
 0x733   :  { %5323 = vrcp.f32 %v3086_v57  ;;  %v5320_v2 = vpop.eup %5319 }
 0x734   :  { %v4116_v63 = vmul.f32 -1.442695, %v3400_v60  ;;  %v3163_v11 = vadd.f32 1.0, %v5320_v2  ;;  %v4122_v2 = vld [vmem:[%s6210_s2 + $0xe] sm:$0x3] }
 0x736   :  { %5325 = vpow2.f32 %v4116_v63 }
 0x738   :  { %v5322_v50 = vpop.eup %5321 }
 0x739   :  { %v3327_v5 = vadd.f32 1.0, %v5322_v50 }
 0x73b   :  { %5327 = vrcp.f32 %v3327_v5 }
 0x73c   :  { %5329 = vrcp.f32 %v3163_v11 }
 0x73d   :  { %v5324_v7 = vpop.eup %5323 }
 0x73e   :  { %v3236_v15 = vmul.f32 %v5324_v7, %v3233_v6 }
 0x740   :  { %v5326_v16 = vpop.eup %5325  ;;  %v3237_v58 = vadd.f32 %v4104_v10, %v3236_v15  ;;  %v4130_v15 = vld [vmem:[%s6210_s2 + $0x10] sm:$0x3] }
 0x741   :  { %v3404_v18 = vadd.f32 1.0, %v5326_v16 }
 0x742   :  { %5331 = vtanh.f32 %v3237_v58 }
 0x743   :  { %5333 = vrcp.f32 %v3404_v18 }
 0x745   :  { %v5328_v22 = vpop.eup %5327 }
 0x746   :  { %v3477_v24 = vmul.f32 %v5328_v22, %v3474_v19  ;;  %v5330_v25 = vpop.eup %5329 }
 0x747   :  { %v3239_v30 = vsub.f32 1.0, %v5330_v25  ;;  %v3241_v32 = vmul.f32 %v5330_v25, %v6044_v42  ;;  %v4128_v42 = vld [vmem:[%s6207_s0 + $0x10] sm:$0x3] }
 0x748   :  { %v3478_v3 = vadd.f32 %v4112_v23, %v3477_v24 }
 0x74a   :  { %5335 = vtanh.f32 %v3478_v3 }
 0x74c   :  { %v5332_v31 = vpop.eup %5331 }
 0x74d   :  { %v3240_v35 = vmul.f32 %v5332_v31, %v3239_v30  ;;  %v5334_v38 = vpop.eup %5333 }
 0x74e   :  { %v3480_v39 = vsub.f32 1.0, %v5334_v38  ;;  %v3482_v9 = vmul.f32 %v5334_v38, %v6067_v29 }
 0x74f   :  { %v3242_v36 = vadd.f32 %v3241_v32, %v3240_v35 }
 0x751   :  { %4118 = vst.msk [vmem:[%s6211_s8 + $0xc] sm:$0x3] %vm60_vm0, %v3242_v36  ;;  %3484 = vst.msk [vmem:[#allocation2] sm:$0x3] %vm60_vm0, %v3242_v36 }
 0x754   :  { %v5336_v4 = vpop.eup %5335 }
 0x755   :  { %v3481_v17 = vmul.f32 %v5336_v4, %v3480_v39 }
 0x757   :  { %v3483_v43 = vadd.f32 %v3482_v9, %v3481_v17 }
 0x758   :  { %v6128_v44 = vld [vmem:[#allocation2] sm:$0x3] }
 0x759   :  { %4119 = vst.msk [vmem:[%s6211_s8 + $0x12] sm:$0x3] %vm60_vm0, %v3483_v43  ;;  %3485 = vst.msk [vmem:[#allocation3] sm:$0x3] %vm60_vm0, %v3483_v43  ;;  %4849 = vmatmul.mubr.msk.f32.vlgmr.msra.gmra.mrb[42].mxu0 %vm69_vm2, %v6128_v44  ;;  %4860 = vmatmul.mubr.msk.f32.vlgmr.msra.gmra.mrb[42].mxu1 %vm69_vm2, %v6128_v44 }
 0x75a   :  { %5172 = vmatpush3.bf16.msra.mxu0 %v5474_v21  ;;  %5178 = vmatpush3.bf16.msra.mxu1 %v5471_v20 }
 0x75b   :  { %5173 = vmatprep.subr.bf16.mxu0 %v5359_v0  ;;  %5179 = vmatprep.subr.bf16.mxu1 %v5359_v0 }
 0x75c   :  { %4870 = vmatprep.mubr.msk.f32.mxu0 %vm5360_vm1, %v5361_v8  ;;  %4881 = vmatprep.mubr.msk.f32.mxu1 %vm5360_vm1, %v5361_v8 }
 0x75e   :  { %5175 = vmatpush3.bf16.msra.mxu0 %v5499_v28  ;;  %5181 = vmatpush3.bf16.msra.mxu1 %v5497_v27 }
 0x75f   :  { %5182 = vmatprep.subr.bf16.mxu0 %v5359_v0  ;;  %5188 = vmatprep.subr.bf16.mxu1 %v5359_v0 }
 0x760   :  { %v6151_v21 = vld [vmem:[#allocation3] sm:$0x3] }
 0x761   :  { %4871 = vmatmul.mubr.msk.f32.vlgmr.msra.gmra.mrb[44].mxu0 %vm69_vm2, %v6128_v44  ;;  %4882 = vmatmul.mubr.msk.f32.vlgmr.msra.gmra.mrb[44].mxu1 %vm69_vm2, %v6151_v21 }
 0x762   :  { %5184 = vmatpush3.bf16.msra.mxu0 %v5523_v34  ;;  %5190 = vmatpush3.bf16.msra.mxu1 %v5533_v37 }
 0x763   :  { %5185 = vmatprep.subr.bf16.mxu0 %v5359_v0  ;;  %5191 = vmatprep.subr.bf16.mxu1 %v5359_v0  ;;  %v4120_v0 = vld [vmem:[%s6207_s0 + $0xe] sm:$0x3] }
 0x764   :  { %4892 = vmatprep.mubr.msk.f32.mxu0 %vm5360_vm1, %v5361_v8  ;;  %4903 = vmatprep.mubr.msk.f32.mxu1 %vm5360_vm1, %v5361_v8  ;;  %v4121_v8 = vld [vmem:[%s6208_s1 + $0xe] sm:$0x3] }
 0x766   :  { %5187 = vmatpush3.bf16.msra.mxu0 %v5546_v40  ;;  %5193 = vmatpush3.bf16.msra.mxu1 %v5552_v41 }
 0x769   :  { %4893 = vmatmul.mubr.msk.f32.vlgmr.msra.gmra.mrb[46].mxu0 %vm69_vm2, %v6151_v21  ;;  %4904 = vmatmul.mubr.msk.f32.vlgmr.msra.gmra.mrb[46].mxu1 %vm69_vm2, %v6151_v21 }
 0x82c   :  { %v3566_v20 = vpop.f32.mrb[42].mxu0  ;;  %v3643_v27 = vpop.f32.mrb[42].mxu1 }
 0x82d   :  { %v3570_v28 = vadd.f32 %v4120_v0, %v3566_v20  ;;  %v4850_v34 = vpop.f32.mrb[43].mxu0  ;;  %v4861_v37 = vpop.f32.mrb[43].mxu1  ;;  %v3647_v41 = vadd.f32 %v4121_v8, %v3643_v27 }
 0x82f   :  { %v4124_v40 = vmul.f32 -1.442695, %v3570_v28  ;;  %v4126_v29 = vmul.f32 -1.442695, %v3647_v41 }
 0x831   :  { %5337 = vpow2.f32 %v4124_v40 }
 0x832   :  { %5339 = vpow2.f32 %v4126_v29 }
 0x834   :  { %v3720_v45 = vpop.f32.mrb[44].mxu0  ;;  %v3807_v46 = vpop.f32.mrb[44].mxu1 }
 0x835   :  { %v4872_v13 = vpop.f32.mrb[45].mxu0  ;;  %v3811_v47 = vadd.f32 %v4128_v42, %v3807_v46  ;;  %v4883_v14 = vpop.f32.mrb[45].mxu1  ;;  %v3721_v62 = vadd.f32 %v6022_v1, %v3720_v45 }
 0x837   :  { %v4132_v48 = vmul.f32 -1.442695, %v3811_v47 }
 0x839   :  { %5341 = vpow2.f32 %v4132_v48 }
 0x83b   :  { %v5338_v33 = vpop.eup %5337 }
 0x83c   :  { %v3574_v51 = vadd.f32 1.0, %v5338_v33  ;;  %v3884_v52 = vpop.f32.mrb[46].mxu0  ;;  %v3961_v53 = vpop.f32.mrb[46].mxu1 }
 0x83d   :  { %v3888_v54 = vadd.f32 %v4129_v49, %v3884_v52  ;;  %v4894_v55 = vpop.f32.mrb[47].mxu0  ;;  %v4905_v56 = vpop.f32.mrb[47].mxu1  ;;  %v3962_v7 = vadd.f32 %v6031_v12, %v3961_v53 }
 0x83e   :  { %5343 = vrcp.f32 %v3574_v51  ;;  %v5340_v26 = vpop.eup %5339 }
 0x83f   :  { %v4134_v57 = vmul.f32 -1.442695, %v3888_v54  ;;  %v3651_v61 = vadd.f32 1.0, %v5340_v26 }
 0x841   :  { %5345 = vpow2.f32 %v4134_v57 }
 0x843   :  { %v5342_v59 = vpop.eup %5341 }
 0x844   :  { %v3815_v60 = vadd.f32 1.0, %v5342_v59 }
 0x846   :  { %5347 = vrcp.f32 %v3815_v60 }
 0x847   :  { %5349 = vrcp.f32 %v3651_v61 }
 0x848   :  { %v5344_v63 = vpop.eup %5343 }
 0x849   :  { %v3724_v50 = vmul.f32 %v5344_v63, %v3721_v62 }
 0x84b   :  { %v5346_v5 = vpop.eup %5345  ;;  %v3725_v11 = vadd.f32 %v4122_v2, %v3724_v50 }
 0x84c   :  { %v3892_v6 = vadd.f32 1.0, %v5346_v5 }
 0x84d   :  { %5351 = vtanh.f32 %v3725_v11 }
 0x84e   :  { %5353 = vrcp.f32 %v3892_v6 }
 0x850   :  { %v5348_v10 = vpop.eup %5347 }
 0x851   :  { %v3965_v1 = vmul.f32 %v5348_v10, %v3962_v7  ;;  %v5350_v16 = vpop.eup %5349 }
 0x852   :  { %v3727_v18 = vsub.f32 1.0, %v5350_v16  ;;  %v3729_v22 = vmul.f32 %v5350_v16, %v6128_v44 }
 0x853   :  { %v3966_v58 = vadd.f32 %v4130_v15, %v3965_v1 }
 0x855   :  { %5355 = vtanh.f32 %v3966_v58 }
 0x857   :  { %v5352_v19 = vpop.eup %5351 }
 0x858   :  { %v3728_v23 = vmul.f32 %v5352_v19, %v3727_v18  ;;  %v5354_v25 = vpop.eup %5353 }
 0x859   :  { %v3968_v12 = vsub.f32 1.0, %v5354_v25  ;;  %v3970_v30 = vmul.f32 %v5354_v25, %v6151_v21 }
 0x85a   :  { %v3730_v24 = vadd.f32 %v3729_v22, %v3728_v23 }
 0x85c   :  { %3972 = vst.msk [vmem:[#allocation2] sm:$0x3] %vm60_vm0, %v3730_v24  ;;  %4136 = vst.msk [vmem:[%s6211_s8 + $0xe] sm:$0x3] %vm60_vm0, %v3730_v24 }
 0x85f   :  { %v5356_v3 = vpop.eup %5355 }
 0x860   :  { %v3969_v31 = vmul.f32 %v5356_v3, %v3968_v12 }
 0x862   :  { %v3971_v32 = vadd.f32 %v3970_v30, %v3969_v31 }
 0x864   :  { %3973 = vst.msk [vmem:[#allocation3] sm:$0x3] %vm60_vm0, %v3971_v32  ;;  %4137 = vst.msk [vmem:[%s6211_s8 + $0x10] sm:$0x3] %vm60_vm0, %v3971_v32 }

</bundles_post_ra>
